<compile_context>
chip_gen: v6e
topology: v6e:2x2x1
jax: 0.10.0
libtpu: 0.0.40
codegen_flags: <defaults>
</compile_context>

<pallas_src>
import functools

import jax
import jax.numpy as jnp
from jax.experimental import pallas as pl
from jax.experimental.pallas import tpu as pltpu

_LANE = 128


def _round_up(x, m):
    return ((x + m - 1) // m) * m


def _convt_leaky_kernel(xp_ref, w_ref, o_ref, *, h, w, cout):
    # xp_ref: (h+2, w+2, Cp)  padded NHWC input tile for one batch element (f32)
    # w_ref : (9, Cp, Fp)     flipped conv weight, one (Cp, Fp) matrix per tap
    # o_ref : (cout, h*w)     output, already channel-major (NCHW-friendly)
    hw = h * w
    cp = xp_ref.shape[-1]
    fp = w_ref.shape[-1]

    acc = jnp.zeros((hw, fp), dtype=jnp.float32)
    # Nine shifted windows == im2col, done as VMEM slices; unrolled at trace time.
    for k in range(9):
        i, j = divmod(k, 3)
        xs = xp_ref[i:i + h, j:j + w, :].reshape(hw, cp)          # (hw, Cp)
        acc = acc + jnp.dot(xs, w_ref[k], preferred_element_type=jnp.float32)

    # Fused leaky select on the VPU, then one small XLU transpose so the store
    # is directly in (Cout, H*W) layout (padded Fp columns are dropped here).
    y = jnp.where(acc > 0, acc, acc * -3.7)                        # (hw, Fp)
    o_ref[...] = y.T[:cout, :]                                     # (cout, hw)


def prepare_weight(w_ciok):
    """PyTorch ConvTranspose2d weight (Cin, Cout, 3, 3) -> (9, Cin_pad, Cout_pad) f32.

    W_mat[i*3+j, ci, co] = W[ci, co, 2-i, 2-j]  (flipped kernel of the
    equivalent regular conv).  Precompute once.
    """
    cin, cout, kh, kw = w_ciok.shape
    assert kh == 3 and kw == 3
    cp = _round_up(cin, _LANE)      # 22  -> 128
    fp = _round_up(cout, _LANE)     # 162 -> 256
    w_flip = jnp.transpose(w_ciok[:, :, ::-1, ::-1], (2, 3, 0, 1)).reshape(9, cin, cout)
    w_mat = jnp.pad(w_flip, ((0, 0), (0, cp - cin), (0, fp - cout))).astype(jnp.float32)
    return w_mat, int(cout)


@functools.partial(jax.jit, static_argnames=("cout",))
def conv_transpose_leaky(x_nchw, w_mat, *, cout):
    """x_nchw: (N, Cin, H, W) f32; w_mat: (9, Cin_pad, Cout_pad) f32 from prepare_weight."""
    n, cin, h, w = x_nchw.shape
    _, cp, fp = w_mat.shape
    hw = h * w

    # Tiny prologue: NCHW -> NHWC, +1 spatial halo, channel pad to lane width.
    # (~tens of KiB; everything else happens inside the kernel.)
    xp = jnp.transpose(x_nchw, (0, 2, 3, 1))
    xp = jnp.pad(xp, ((0, 0), (1, 1), (1, 1), (0, cp - cin)))      # (N, H+2, W+2, Cp)

    kernel = functools.partial(_convt_leaky_kernel, h=h, w=w, cout=cout)

    flops = 2 * n * 9 * hw * cp * fp
    bytes_accessed = xp.size * 4 + w_mat.size * 4 + n * cout * hw * 4

    out = pl.pallas_call(
        kernel,
        out_shape=jax.ShapeDtypeStruct((n, cout, hw), jnp.float32),
        grid_spec=pltpu.PrefetchScalarGridSpec(
            num_scalar_prefetch=0,
            grid=(n,),
            in_specs=[
                # One batch element per step (squeezed batch dim).
                pl.BlockSpec((None, h + 2, w + 2, cp), lambda b: (b, 0, 0, 0)),
                # Weight: constant block index -> resident in VMEM across the grid.
                pl.BlockSpec((9, cp, fp), lambda b: (0, 0, 0)),
            ],
            out_specs=pl.BlockSpec((None, cout, hw), lambda b: (b, 0, 0)),
        ),
        compiler_params=pltpu.CompilerParams(
            dimension_semantics=("parallel",),   # batch steps shard across TCs (v7x)
        ),
        cost_estimate=pl.CostEstimate(
            flops=flops, transcendentals=0, bytes_accessed=bytes_accessed
        ),
    )(xp, w_mat)

    # Free metadata reshape: (N, Cout, H*W) -> (N, Cout, H, W); no slice/transpose.
    return out.reshape(n, cout, h, w)


if __name__ == "__main__":
    # Channels fixed by the layer (22 -> 162); batch / spatial kept small.
    N, CIN, H, W = 2, 22, 8, 8
    COUT = 162

    key = jax.random.PRNGKey(0)
    kx, kw_key = jax.random.split(key)
    x = jax.random.normal(kx, (N, CIN, H, W), dtype=jnp.float32)
    # PyTorch ConvTranspose2d weight layout: (in_channels, out_channels, kH, kW).
    weight = jax.random.normal(kw_key, (CIN, COUT, 3, 3), dtype=jnp.float32) * 0.05

    w_mat, cout = prepare_weight(weight)
    out = conv_transpose_leaky(x, w_mat, cout=cout)
    out = jax.block_until_ready(out)

    # Reference: the equivalent regular conv (flipped kernel, in/out swapped)
    # followed by the same leaky select.
    w_conv = jnp.transpose(weight[:, :, ::-1, ::-1], (1, 0, 2, 3))  # (Cout, Cin, 3, 3)
    y_ref = jax.lax.conv_general_dilated(
        x, w_conv, window_strides=(1, 1), padding=((1, 1), (1, 1)),
        dimension_numbers=("NCHW", "OIHW", "NCHW"),
    )
    ref = jnp.where(y_ref > 0, y_ref, y_ref * -3.7)

    assert out.shape == (N, COUT, H, W)
    assert jnp.allclose(out, ref, atol=2e-2, rtol=2e-2)

    print("KERNEL_OK")
</pallas_src>

<mosaic_0001>
module attributes {stable_mosaic.version = 11 : i64} {
  func.func @_convt_leaky_kernel(%arg0: i32, %arg1: memref<1x10x10x128xf32, #tpu.memory_space<vmem>>, %arg2: memref<9x128x256xf32, #tpu.memory_space<vmem>>, %arg3: memref<1x162x64xf32, #tpu.memory_space<vmem>>) attributes {dimension_semantics = [#tpu.dimension_semantics<parallel>], iteration_bounds = array<i64: 2>, scalar_prefetch = 0 : i64, scratch_operands = 0 : i64, tpu.core_type = #tpu.core_type<tc>, window_params = [{transform_indices = @transform_0, window_bounds = array<i64: 1, 10, 10, 128>}, {pipeline_mode = #tpu.pipeline_mode<synchronous>, transform_indices = @transform_1, window_bounds = array<i64: 9, 128, 256>}, {transform_indices = @transform_2, window_bounds = array<i64: 1, 162, 64>}]} {
    %cst = arith.constant 0.000000e+00 : f32
    %0 = vector.broadcast %cst : f32 to vector<64x256xf32>
    %c0 = arith.constant 0 : index
    %c0_0 = arith.constant 0 : index
    %c0_1 = arith.constant 0 : index
    %c0_2 = arith.constant 0 : index
    %1 = vector.load %arg1[%c0, %c0_0, %c0_1, %c0_2] : memref<1x10x10x128xf32, #tpu.memory_space<vmem>>, vector<1x8x8x128xf32>
    %2 = vector.shape_cast %1 : vector<1x8x8x128xf32> to vector<8x8x128xf32>
    %3 = vector.shape_cast %2 : vector<8x8x128xf32> to vector<64x128xf32>
    %c0_3 = arith.constant 0 : index
    %c0_4 = arith.constant 0 : index
    %c0_5 = arith.constant 0 : index
    %4 = vector.load %arg2[%c0_3, %c0_4, %c0_5] : memref<9x128x256xf32, #tpu.memory_space<vmem>>, vector<1x128x256xf32>
    %5 = vector.shape_cast %4 : vector<1x128x256xf32> to vector<128x256xf32>
    %cst_6 = arith.constant dense<0.000000e+00> : vector<64x256xf32>
    %6 = tpu.matmul %3, %5, %cst_6 {dimension_numbers = #tpu.dot_dimension_numbers<[1], [0], [0], [1], [0, 0, 1, 1], [], []>} : vector<64x128xf32>, vector<128x256xf32>, vector<64x256xf32> -> vector<64x256xf32>
    %7 = arith.addf %0, %6 : vector<64x256xf32>
    %c0_7 = arith.constant 0 : index
    %c0_8 = arith.constant 0 : index
    %c1 = arith.constant 1 : index
    %c0_9 = arith.constant 0 : index
    %8 = vector.load %arg1[%c0_7, %c0_8, %c1, %c0_9] : memref<1x10x10x128xf32, #tpu.memory_space<vmem>>, vector<1x8x8x128xf32>
    %9 = vector.shape_cast %8 : vector<1x8x8x128xf32> to vector<8x8x128xf32>
    %10 = vector.shape_cast %9 : vector<8x8x128xf32> to vector<64x128xf32>
    %c1_10 = arith.constant 1 : index
    %c0_11 = arith.constant 0 : index
    %c0_12 = arith.constant 0 : index
    %11 = vector.load %arg2[%c1_10, %c0_11, %c0_12] : memref<9x128x256xf32, #tpu.memory_space<vmem>>, vector<1x128x256xf32>
    %12 = vector.shape_cast %11 : vector<1x128x256xf32> to vector<128x256xf32>
    %cst_13 = arith.constant dense<0.000000e+00> : vector<64x256xf32>
    %13 = tpu.matmul %10, %12, %cst_13 {dimension_numbers = #tpu.dot_dimension_numbers<[1], [0], [0], [1], [0, 0, 1, 1], [], []>} : vector<64x128xf32>, vector<128x256xf32>, vector<64x256xf32> -> vector<64x256xf32>
    %14 = arith.addf %7, %13 : vector<64x256xf32>
    %c0_14 = arith.constant 0 : index
    %c0_15 = arith.constant 0 : index
    %c2 = arith.constant 2 : index
    %c0_16 = arith.constant 0 : index
    %15 = vector.load %arg1[%c0_14, %c0_15, %c2, %c0_16] : memref<1x10x10x128xf32, #tpu.memory_space<vmem>>, vector<1x8x8x128xf32>
    %16 = vector.shape_cast %15 : vector<1x8x8x128xf32> to vector<8x8x128xf32>
    %17 = vector.shape_cast %16 : vector<8x8x128xf32> to vector<64x128xf32>
    %c2_17 = arith.constant 2 : index
    %c0_18 = arith.constant 0 : index
    %c0_19 = arith.constant 0 : index
    %18 = vector.load %arg2[%c2_17, %c0_18, %c0_19] : memref<9x128x256xf32, #tpu.memory_space<vmem>>, vector<1x128x256xf32>
    %19 = vector.shape_cast %18 : vector<1x128x256xf32> to vector<128x256xf32>
    %cst_20 = arith.constant dense<0.000000e+00> : vector<64x256xf32>
    %20 = tpu.matmul %17, %19, %cst_20 {dimension_numbers = #tpu.dot_dimension_numbers<[1], [0], [0], [1], [0, 0, 1, 1], [], []>} : vector<64x128xf32>, vector<128x256xf32>, vector<64x256xf32> -> vector<64x256xf32>
    %21 = arith.addf %14, %20 : vector<64x256xf32>
    %c0_21 = arith.constant 0 : index
    %c1_22 = arith.constant 1 : index
    %c0_23 = arith.constant 0 : index
    %c0_24 = arith.constant 0 : index
    %22 = vector.load %arg1[%c0_21, %c1_22, %c0_23, %c0_24] : memref<1x10x10x128xf32, #tpu.memory_space<vmem>>, vector<1x8x8x128xf32>
    %23 = vector.shape_cast %22 : vector<1x8x8x128xf32> to vector<8x8x128xf32>
    %24 = vector.shape_cast %23 : vector<8x8x128xf32> to vector<64x128xf32>
    %c3 = arith.constant 3 : index
    %c0_25 = arith.constant 0 : index
    %c0_26 = arith.constant 0 : index
    %25 = vector.load %arg2[%c3, %c0_25, %c0_26] : memref<9x128x256xf32, #tpu.memory_space<vmem>>, vector<1x128x256xf32>
    %26 = vector.shape_cast %25 : vector<1x128x256xf32> to vector<128x256xf32>
    %cst_27 = arith.constant dense<0.000000e+00> : vector<64x256xf32>
    %27 = tpu.matmul %24, %26, %cst_27 {dimension_numbers = #tpu.dot_dimension_numbers<[1], [0], [0], [1], [0, 0, 1, 1], [], []>} : vector<64x128xf32>, vector<128x256xf32>, vector<64x256xf32> -> vector<64x256xf32>
    %28 = arith.addf %21, %27 : vector<64x256xf32>
    %c0_28 = arith.constant 0 : index
    %c1_29 = arith.constant 1 : index
    %c1_30 = arith.constant 1 : index
    %c0_31 = arith.constant 0 : index
    %29 = vector.load %arg1[%c0_28, %c1_29, %c1_30, %c0_31] : memref<1x10x10x128xf32, #tpu.memory_space<vmem>>, vector<1x8x8x128xf32>
    %30 = vector.shape_cast %29 : vector<1x8x8x128xf32> to vector<8x8x128xf32>
    %31 = vector.shape_cast %30 : vector<8x8x128xf32> to vector<64x128xf32>
    %c4 = arith.constant 4 : index
    %c0_32 = arith.constant 0 : index
    %c0_33 = arith.constant 0 : index
    %32 = vector.load %arg2[%c4, %c0_32, %c0_33] : memref<9x128x256xf32, #tpu.memory_space<vmem>>, vector<1x128x256xf32>
    %33 = vector.shape_cast %32 : vector<1x128x256xf32> to vector<128x256xf32>
    %cst_34 = arith.constant dense<0.000000e+00> : vector<64x256xf32>
    %34 = tpu.matmul %31, %33, %cst_34 {dimension_numbers = #tpu.dot_dimension_numbers<[1], [0], [0], [1], [0, 0, 1, 1], [], []>} : vector<64x128xf32>, vector<128x256xf32>, vector<64x256xf32> -> vector<64x256xf32>
    %35 = arith.addf %28, %34 : vector<64x256xf32>
    %c0_35 = arith.constant 0 : index
    %c1_36 = arith.constant 1 : index
    %c2_37 = arith.constant 2 : index
    %c0_38 = arith.constant 0 : index
    %36 = vector.load %arg1[%c0_35, %c1_36, %c2_37, %c0_38] : memref<1x10x10x128xf32, #tpu.memory_space<vmem>>, vector<1x8x8x128xf32>
    %37 = vector.shape_cast %36 : vector<1x8x8x128xf32> to vector<8x8x128xf32>
    %38 = vector.shape_cast %37 : vector<8x8x128xf32> to vector<64x128xf32>
    %c5 = arith.constant 5 : index
    %c0_39 = arith.constant 0 : index
    %c0_40 = arith.constant 0 : index
    %39 = vector.load %arg2[%c5, %c0_39, %c0_40] : memref<9x128x256xf32, #tpu.memory_space<vmem>>, vector<1x128x256xf32>
    %40 = vector.shape_cast %39 : vector<1x128x256xf32> to vector<128x256xf32>
    %cst_41 = arith.constant dense<0.000000e+00> : vector<64x256xf32>
    %41 = tpu.matmul %38, %40, %cst_41 {dimension_numbers = #tpu.dot_dimension_numbers<[1], [0], [0], [1], [0, 0, 1, 1], [], []>} : vector<64x128xf32>, vector<128x256xf32>, vector<64x256xf32> -> vector<64x256xf32>
    %42 = arith.addf %35, %41 : vector<64x256xf32>
    %c0_42 = arith.constant 0 : index
    %c2_43 = arith.constant 2 : index
    %c0_44 = arith.constant 0 : index
    %c0_45 = arith.constant 0 : index
    %43 = vector.load %arg1[%c0_42, %c2_43, %c0_44, %c0_45] : memref<1x10x10x128xf32, #tpu.memory_space<vmem>>, vector<1x8x8x128xf32>
    %44 = vector.shape_cast %43 : vector<1x8x8x128xf32> to vector<8x8x128xf32>
    %45 = vector.shape_cast %44 : vector<8x8x128xf32> to vector<64x128xf32>
    %c6 = arith.constant 6 : index
    %c0_46 = arith.constant 0 : index
    %c0_47 = arith.constant 0 : index
    %46 = vector.load %arg2[%c6, %c0_46, %c0_47] : memref<9x128x256xf32, #tpu.memory_space<vmem>>, vector<1x128x256xf32>
    %47 = vector.shape_cast %46 : vector<1x128x256xf32> to vector<128x256xf32>
    %cst_48 = arith.constant dense<0.000000e+00> : vector<64x256xf32>
    %48 = tpu.matmul %45, %47, %cst_48 {dimension_numbers = #tpu.dot_dimension_numbers<[1], [0], [0], [1], [0, 0, 1, 1], [], []>} : vector<64x128xf32>, vector<128x256xf32>, vector<64x256xf32> -> vector<64x256xf32>
    %49 = arith.addf %42, %48 : vector<64x256xf32>
    %c0_49 = arith.constant 0 : index
    %c2_50 = arith.constant 2 : index
    %c1_51 = arith.constant 1 : index
    %c0_52 = arith.constant 0 : index
    %50 = vector.load %arg1[%c0_49, %c2_50, %c1_51, %c0_52] : memref<1x10x10x128xf32, #tpu.memory_space<vmem>>, vector<1x8x8x128xf32>
    %51 = vector.shape_cast %50 : vector<1x8x8x128xf32> to vector<8x8x128xf32>
    %52 = vector.shape_cast %51 : vector<8x8x128xf32> to vector<64x128xf32>
    %c7 = arith.constant 7 : index
    %c0_53 = arith.constant 0 : index
    %c0_54 = arith.constant 0 : index
    %53 = vector.load %arg2[%c7, %c0_53, %c0_54] : memref<9x128x256xf32, #tpu.memory_space<vmem>>, vector<1x128x256xf32>
    %54 = vector.shape_cast %53 : vector<1x128x256xf32> to vector<128x256xf32>
    %cst_55 = arith.constant dense<0.000000e+00> : vector<64x256xf32>
    %55 = tpu.matmul %52, %54, %cst_55 {dimension_numbers = #tpu.dot_dimension_numbers<[1], [0], [0], [1], [0, 0, 1, 1], [], []>} : vector<64x128xf32>, vector<128x256xf32>, vector<64x256xf32> -> vector<64x256xf32>
    %56 = arith.addf %49, %55 : vector<64x256xf32>
    %c0_56 = arith.constant 0 : index
    %c2_57 = arith.constant 2 : index
    %c2_58 = arith.constant 2 : index
    %c0_59 = arith.constant 0 : index
    %57 = vector.load %arg1[%c0_56, %c2_57, %c2_58, %c0_59] : memref<1x10x10x128xf32, #tpu.memory_space<vmem>>, vector<1x8x8x128xf32>
    %58 = vector.shape_cast %57 : vector<1x8x8x128xf32> to vector<8x8x128xf32>
    %59 = vector.shape_cast %58 : vector<8x8x128xf32> to vector<64x128xf32>
    %c8 = arith.constant 8 : index
    %c0_60 = arith.constant 0 : index
    %c0_61 = arith.constant 0 : index
    %60 = vector.load %arg2[%c8, %c0_60, %c0_61] : memref<9x128x256xf32, #tpu.memory_space<vmem>>, vector<1x128x256xf32>
    %61 = vector.shape_cast %60 : vector<1x128x256xf32> to vector<128x256xf32>
    %cst_62 = arith.constant dense<0.000000e+00> : vector<64x256xf32>
    %62 = tpu.matmul %59, %61, %cst_62 {dimension_numbers = #tpu.dot_dimension_numbers<[1], [0], [0], [1], [0, 0, 1, 1], [], []>} : vector<64x128xf32>, vector<128x256xf32>, vector<64x256xf32> -> vector<64x256xf32>
    %63 = arith.addf %56, %62 : vector<64x256xf32>
    %cst_63 = arith.constant 0.000000e+00 : f32
    %64 = vector.broadcast %cst_63 : f32 to vector<64x256xf32>
    %65 = arith.cmpf ogt, %63, %64 : vector<64x256xf32>
    %cst_64 = arith.constant -3.700000e+00 : f32
    %66 = vector.broadcast %cst_64 : f32 to vector<64x256xf32>
    %67 = arith.mulf %63, %66 : vector<64x256xf32>
    %68 = arith.select %65, %63, %67 : vector<64x256xi1>, vector<64x256xf32>
    %69 = tpu.transpose %68, [1, 0] : vector<64x256xf32> -> vector<256x64xf32>
    %70 = vector.extract_strided_slice %69 {offsets = [0, 0], sizes = [162, 64], strides = [1, 1]} : vector<256x64xf32> to vector<162x64xf32>
    %c0_65 = arith.constant 0 : index
    %c0_66 = arith.constant 0 : index
    %c0_67 = arith.constant 0 : index
    %71 = vector.load %arg3[%c0_65, %c0_66, %c0_67] : memref<1x162x64xf32, #tpu.memory_space<vmem>>, vector<1x162x64xf32>
    %72 = vector.shape_cast %71 : vector<1x162x64xf32> to vector<162x64xf32>
    %73 = vector.shape_cast %70 : vector<162x64xf32> to vector<1x162x64xf32>
    tpu.vector_store %arg3[%c0_65, %c0_66, %c0_67], %73 {strides = array<i32>} : memref<1x162x64xf32, #tpu.memory_space<vmem>>, vector<1x162x64xf32>,
    return
  }
  func.func @transform_0(%arg0: i32) -> (i32, i32, i32, i32) {
    %c0_i32 = arith.constant 0 : i32
    %c0_i32_0 = arith.constant 0 : i32
    %c0_i32_1 = arith.constant 0 : i32
    %c0_i32_2 = arith.constant 0 : i32
    return %arg0, %c0_i32, %c0_i32_0, %c0_i32_1 : i32, i32, i32, i32
  }
  func.func @transform_1(%arg0: i32) -> (i32, i32, i32) {
    %c0_i32 = arith.constant 0 : i32
    %c0_i32_0 = arith.constant 0 : i32
    %c0_i32_1 = arith.constant 0 : i32
    %c0_i32_2 = arith.constant 0 : i32
    return %c0_i32, %c0_i32_0, %c0_i32_1 : i32, i32, i32
  }
  func.func @transform_2(%arg0: i32) -> (i32, i32, i32) {
    %c0_i32 = arith.constant 0 : i32
    %c0_i32_0 = arith.constant 0 : i32
    %c0_i32_1 = arith.constant 0 : i32
    return %arg0, %c0_i32, %c0_i32_0 : i32, i32, i32
  }
}

</mosaic_0001>

<bundles_post_ra>
// kernel: conv_transpose_leaky.1
= control target key start
LH: loop header
LB: loop body
LE: loop exit
PB: predicated region body
PF: predicated region fallthrough
CT: control target
= control target key end

     0   :  { %7 = vsyncpa [#allocation3], 0  ;;  %s2032_s9 = smov 0   ;;  %s2530_s0 = inlined_call_operand.vmem [shape: f32[2,10,10,128], index: 0, kind: input, shape index: {}]   ;;  %s2531_s1 = inlined_call_operand.hbm [shape: f32[9,128,256], index: 1, kind: input, shape index: {}]   ;;  %s2532_s2 = inlined_call_operand.vmem [shape: f32[2,162,64], index: 2, kind: output, shape index: {}]  }
   0x1 LB: > { %s2038_s10 = sadd.s32 4294967295, %s2011_s9   ;;  %p1862_p0 = scmp.ge.s32.totalorder %s2011_s9, 1  ;;  %s2011_s9 = sphi %s2032_s9, %s13_s9  }
   0x2   : > { %p91_p1 = scmp.lt.s32.totalorder %s2011_s9, 3  ;;  %s2013_s11 = smov [#allocation2]  }
   0x3   : > { %s103_s12 = sshll.u32 %s2013_s11, 4  ;;  %p1961_p3 = scmp.eq.s32.totalorder %s2038_s10, 0  ;;  %s104_s12 = int_to_ptr.vmem [resolvable:$true] %s103_s12 }
   0x4   : > { %p2042_p2 = pnand %p1862_p0, %p91_p1  ;;  %s1986_s14 = scalar_lea.vmem %s104_s12, 36864 }
   0x5   : > { %p1987_p7 = scmp.ne.s32.totalorder %s104_s12, %s1986_s14  ;;  %p1994_p10 = scmp.lt.s32.totalorder %s104_s12, %s104_s12 }
   0x6   : > { %p1957_p4 = pneg %p2042_p2  ;;  %p1995_p11 = scmp.lt.s32.totalorder %s1986_s14, %s1986_s14 }
   0x8   : > { %p1958_p5 = pnand %p1961_p3, %p1957_p4  ;;  %p1996_p12 = por %p1995_p11, %p1994_p10 }
   0xa   : > { %p1977_p6 = pneg %p1958_p5 }
   0xc   : > { %p1989_p8 = pnand %p1987_p7, %p1977_p6 }
   0xe   : > { %p1990_p9 = pneg %p1989_p8 }
  0x10   : > { %p1997_p13 = pnand %p1996_p12, %p1990_p9 }
  0x12   : > { %2000 = shalt.err (!%p1997_p13)
}
  0x13   : > { %s2014_s15 = smov 256   ;;  %s2015_s16 = smov 16  }
  0x14   : > { %1960 = dma.hbm_to_vmem [thread:$0]  (!%p1958_p5), %s2531_s1, 36864, %s104_s12, [#allocation3], %s2014_s15, %s2014_s15, %s2015_s16  }
  0x15   : > { %127 = sbr.rel (%p2042_p2) target bundleno = 637 (0x27d), region = 28 }
  0x1a   : > { %2006 = dma.done.wait (%p1961_p3), [#allocation3], 36864  }
  0x1b   : > { %2008 = vsyncadd (%p1961_p3), [#allocation3], 4294930432  ;;  %v2016_v0 = vmov 0.0   ;;  %v239_v1 = vld [vmem:[#allocation2 + $0x1f8] sm:$0xff]  ;;  %v238_v3 = vld [vmem:[#allocation2 + $0x1f0] sm:$0xff]  ;;  %p149_p0 = scmp.lt.s32.totalorder %s2038_s10, 1 }
  0x1c   : > { %304 = vmatprep.mubr.f32.mxu0 %v2016_v0  ;;  %417 = vmatprep.mubr.f32.mxu1 %v2016_v0  ;;  %v198_v2 = vld [vmem:[#allocation2 + $0xf8] sm:$0xff]  ;;  %v197_v4 = vld [vmem:[#allocation2 + $0xf0] sm:$0xff]  ;;  %v237_v5 = vld [vmem:[#allocation2 + $0x1e8] sm:$0xff] }
  0x1d   : > { %240 = vmatprep.subr.mxu0 %v239_v1  ;;  %353 = vmatprep.subr.mxu1 %v198_v2  ;;  %v196_v6 = vld [vmem:[#allocation2 + $0xe8] sm:$0xff]  ;;  %v236_v7 = vld [vmem:[#allocation2 + $0x1e0] sm:$0xff]  ;;  %v235_v9 = vld [vmem:[#allocation2 + $0x1d8] sm:$0xff]  ;;  %s2581_s10 = smov (!%p149_p0, %s2038_s10), 1 }
  0x1e   : > { %241 = vmatpush1.msra.mxu0 %v238_v3  ;;  %354 = vmatpush1.msra.mxu1 %v197_v4  ;;  %v195_v8 = vld [vmem:[#allocation2 + $0xe0] sm:$0xff]  ;;  %v194_v10 = vld [vmem:[#allocation2 + $0xd8] sm:$0xff]  ;;  %v234_v11 = vld [vmem:[#allocation2 + $0x1d0] sm:$0xff]  ;;  %s1951_s19 = smul.u32 160, %s2581_s10 }
  0x1f   : > { %242 = vmatprep.subr.mxu0 %v237_v5  ;;  %355 = vmatprep.subr.mxu1 %v196_v6  ;;  %v193_v12 = vld [vmem:[#allocation2 + $0xd0] sm:$0xff]  ;;  %v233_v13 = vld [vmem:[#allocation2 + $0x1c8] sm:$0xff]  ;;  %v232_v15 = vld [vmem:[#allocation2 + $0x1c0] sm:$0xff]  ;;  %s1952_s23 = smul.u32 168, %s2581_s10 }
  0x20   : > { %243 = vmatpush1.msra.mxu0 %v236_v7  ;;  %356 = vmatpush1.msra.mxu1 %v195_v8  ;;  %v192_v14 = vld [vmem:[#allocation2 + $0xc8] sm:$0xff]  ;;  %v191_v16 = vld [vmem:[#allocation2 + $0xc0] sm:$0xff]  ;;  %v231_v17 = vld [vmem:[#allocation2 + $0x1b8] sm:$0xff]  ;;  %s2072_s22 = scalar_lea.vmem %s2530_s0, %s1951_s19 }
  0x21   : > { %244 = vmatprep.subr.mxu0 %v235_v9  ;;  %357 = vmatprep.subr.mxu1 %v194_v10  ;;  %v190_v18 = vld [vmem:[#allocation2 + $0xb8] sm:$0xff]  ;;  %v230_v19 = vld [vmem:[#allocation2 + $0x1b0] sm:$0xff]  ;;  %v229_v21 = vld [vmem:[#allocation2 + $0x1a8] sm:$0xff]  ;;  %s2484_s26 = scalar_lea.vmem %s2532_s2, %s1952_s23 }
  0x22   : > { %245 = vmatpush1.msra.mxu0 %v234_v11  ;;  %358 = vmatpush1.msra.mxu1 %v193_v12  ;;  %v189_v20 = vld [vmem:[#allocation2 + $0xb0] sm:$0xff]  ;;  %v188_v22 = vld [vmem:[#allocation2 + $0xa8] sm:$0xff]  ;;  %v228_v23 = vld [vmem:[#allocation2 + $0x1a0] sm:$0xff] }
  0x23   : > { %246 = vmatprep.subr.mxu0 %v233_v13  ;;  %359 = vmatprep.subr.mxu1 %v192_v14  ;;  %v187_v24 = vld [vmem:[#allocation2 + $0xa0] sm:$0xff]  ;;  %v227_v25 = vld [vmem:[#allocation2 + $0x198] sm:$0xff]  ;;  %v226_v27 = vld [vmem:[#allocation2 + $0x190] sm:$0xff] }
  0x24   : > { %247 = vmatpush1.msra.mxu0 %v232_v15  ;;  %360 = vmatpush1.msra.mxu1 %v191_v16  ;;  %v186_v26 = vld [vmem:[#allocation2 + $0x98] sm:$0xff]  ;;  %v185_v28 = vld [vmem:[#allocation2 + $0x90] sm:$0xff]  ;;  %v225_v29 = vld [vmem:[#allocation2 + $0x188] sm:$0xff] }
  0x25   : > { %248 = vmatprep.subr.mxu0 %v231_v17  ;;  %361 = vmatprep.subr.mxu1 %v190_v18  ;;  %v184_v30 = vld [vmem:[#allocation2 + $0x88] sm:$0xff]  ;;  %v224_v31 = vld [vmem:[#allocation2 + $0x180] sm:$0xff]  ;;  %v223_v33 = vld [vmem:[#allocation2 + $0x178] sm:$0xff] }
  0x26   : > { %249 = vmatpush1.msra.mxu0 %v230_v19  ;;  %362 = vmatpush1.msra.mxu1 %v189_v20  ;;  %v183_v32 = vld [vmem:[#allocation2 + $0x80] sm:$0xff]  ;;  %v182_v34 = vld [vmem:[#allocation2 + $0x78] sm:$0xff]  ;;  %v222_v35 = vld [vmem:[#allocation2 + $0x170] sm:$0xff] }
  0x27   : > { %250 = vmatprep.subr.mxu0 %v229_v21  ;;  %363 = vmatprep.subr.mxu1 %v188_v22  ;;  %v181_v36 = vld [vmem:[#allocation2 + $0x70] sm:$0xff]  ;;  %v221_v37 = vld [vmem:[#allocation2 + $0x168] sm:$0xff]  ;;  %v220_v39 = vld [vmem:[#allocation2 + $0x160] sm:$0xff] }
  0x28   : > { %251 = vmatpush1.msra.mxu0 %v228_v23  ;;  %364 = vmatpush1.msra.mxu1 %v187_v24  ;;  %v180_v38 = vld [vmem:[#allocation2 + $0x68] sm:$0xff]  ;;  %v179_v40 = vld [vmem:[#allocation2 + $0x60] sm:$0xff]  ;;  %v219_v41 = vld [vmem:[#allocation2 + $0x158] sm:$0xff] }
  0x29   : > { %252 = vmatprep.subr.mxu0 %v227_v25  ;;  %365 = vmatprep.subr.mxu1 %v186_v26  ;;  %v178_v42 = vld [vmem:[#allocation2 + $0x58] sm:$0xff]  ;;  %v218_v43 = vld [vmem:[#allocation2 + $0x150] sm:$0xff]  ;;  %v217_v45 = vld [vmem:[#allocation2 + $0x148] sm:$0xff] }
  0x2a   : > { %253 = vmatpush1.msra.mxu0 %v226_v27  ;;  %366 = vmatpush1.msra.mxu1 %v185_v28  ;;  %v177_v44 = vld [vmem:[#allocation2 + $0x50] sm:$0xff]  ;;  %v176_v46 = vld [vmem:[#allocation2 + $0x48] sm:$0xff]  ;;  %v216_v47 = vld [vmem:[#allocation2 + $0x140] sm:$0xff] }
  0x2b   : > { %254 = vmatprep.subr.mxu0 %v225_v29  ;;  %367 = vmatprep.subr.mxu1 %v184_v30  ;;  %v175_v48 = vld [vmem:[#allocation2 + $0x40] sm:$0xff]  ;;  %v215_v49 = vld [vmem:[#allocation2 + $0x138] sm:$0xff]  ;;  %v214_v51 = vld [vmem:[#allocation2 + $0x130] sm:$0xff] }
  0x2c   : > { %255 = vmatpush1.msra.mxu0 %v224_v31  ;;  %368 = vmatpush1.msra.mxu1 %v183_v32  ;;  %v174_v50 = vld [vmem:[#allocation2 + $0x38] sm:$0xff]  ;;  %v173_v52 = vld [vmem:[#allocation2 + $0x30] sm:$0xff]  ;;  %v213_v53 = vld [vmem:[#allocation2 + $0x128] sm:$0xff] }
  0x2d   : > { %256 = vmatprep.subr.mxu0 %v223_v33  ;;  %369 = vmatprep.subr.mxu1 %v182_v34  ;;  %v172_v54 = vld [vmem:[#allocation2 + $0x28] sm:$0xff]  ;;  %v212_v55 = vld [vmem:[#allocation2 + $0x120] sm:$0xff]  ;;  %v211_v57 = vld [vmem:[#allocation2 + $0x118] sm:$0xff] }
  0x2e   : > { %257 = vmatpush1.msra.mxu0 %v222_v35  ;;  %370 = vmatpush1.msra.mxu1 %v181_v36  ;;  %v171_v56 = vld [vmem:[#allocation2 + $0x20] sm:$0xff]  ;;  %v170_v58 = vld [vmem:[#allocation2 + $0x18] sm:$0xff]  ;;  %v210_v59 = vld [vmem:[#allocation2 + $0x110] sm:$0xff] }
  0x2f   : > { %258 = vmatprep.subr.mxu0 %v221_v37  ;;  %371 = vmatprep.subr.mxu1 %v180_v38  ;;  %v169_v60 = vld [vmem:[#allocation2 + $0x10] sm:$0xff]  ;;  %v209_v61 = vld [vmem:[#allocation2 + $0x108] sm:$0xff]  ;;  %v208_v63 = vld [vmem:[#allocation2 + $0x100] sm:$0xff] }
  0x30   : > { %259 = vmatpush1.msra.mxu0 %v220_v39  ;;  %372 = vmatpush1.msra.mxu1 %v179_v40  ;;  %v168_v62 = vld [vmem:[#allocation2 + $0x8] sm:$0xff]  ;;  %v167_v1 = vld [vmem:[#allocation2] sm:$0xff]  ;;  %v506_v4 = vld [vmem:[#allocation2 + $0x2f8] sm:$0xff] }
  0x31   : > { %260 = vmatprep.subr.mxu0 %v219_v41  ;;  %373 = vmatprep.subr.mxu1 %v178_v42  ;;  %v199_v2 = vld [vmem:[%s2072_s22 + $0x1] sm:$0xff]  ;;  %v677_v5 = vld [vmem:[#allocation2 + $0x3f8] sm:$0xff]  ;;  %v505_v6 = vld [vmem:[#allocation2 + $0x2f0] sm:$0xff] }
  0x32   : > { %261 = vmatpush1.msra.mxu0 %v218_v43  ;;  %374 = vmatpush1.msra.mxu1 %v177_v44  ;;  %v159_v3 = vld [vmem:[%s2072_s22] sm:$0xff]  ;;  %v676_v7 = vld [vmem:[#allocation2 + $0x3f0] sm:$0xff]  ;;  %v504_v8 = vld [vmem:[#allocation2 + $0x2e8] sm:$0xff] }
  0x33   : > { %262 = vmatprep.subr.mxu0 %v217_v45  ;;  %375 = vmatprep.subr.mxu1 %v176_v46  ;;  %v675_v9 = vld [vmem:[#allocation2 + $0x3e8] sm:$0xff]  ;;  %v503_v10 = vld [vmem:[#allocation2 + $0x2e0] sm:$0xff]  ;;  %v2077_v12 = vld [vmem:[%s2072_s22 + $0x11] sm:$0xff] }
  0x34   : > { %263 = vmatpush1.msra.mxu0 %v216_v47  ;;  %376 = vmatpush1.msra.mxu1 %v175_v48  ;;  %v674_v11 = vld [vmem:[#allocation2 + $0x3e0] sm:$0xff]  ;;  %v2080_v13 = vld [vmem:[%s2072_s22 + $0x10] sm:$0xff]  ;;  %v502_v14 = vld [vmem:[#allocation2 + $0x2d8] sm:$0xff] }
  0x35   : > { %264 = vmatprep.subr.mxu0 %v215_v49  ;;  %377 = vmatprep.subr.mxu1 %v174_v50  ;;  %v673_v15 = vld [vmem:[#allocation2 + $0x3d8] sm:$0xff]  ;;  %v501_v16 = vld [vmem:[#allocation2 + $0x2d0] sm:$0xff]  ;;  %v500_v18 = vld [vmem:[#allocation2 + $0x2c8] sm:$0xff] }
  0x36   : > { %265 = vmatpush1.msra.mxu0 %v214_v51  ;;  %378 = vmatpush1.msra.mxu1 %v173_v52  ;;  %v672_v17 = vld [vmem:[#allocation2 + $0x3d0] sm:$0xff]  ;;  %v671_v19 = vld [vmem:[#allocation2 + $0x3c8] sm:$0xff]  ;;  %v499_v20 = vld [vmem:[#allocation2 + $0x2c0] sm:$0xff] }
  0x37   : > { %266 = vmatprep.subr.mxu0 %v213_v53  ;;  %379 = vmatprep.subr.mxu1 %v172_v54  ;;  %v670_v21 = vld [vmem:[#allocation2 + $0x3c0] sm:$0xff]  ;;  %v498_v24 = vld [vmem:[#allocation2 + $0x2b8] sm:$0xff]  ;;  %v497_v26 = vld [vmem:[#allocation2 + $0x2b0] sm:$0xff] }
  0x38   : > { %267 = vmatpush1.msra.mxu0 %v212_v55  ;;  %380 = vmatpush1.msra.mxu1 %v171_v56  ;;  %v2087_v22 = vld [vmem:[%s2072_s22 + $0x21] sm:$0xff]  ;;  %v669_v25 = vld [vmem:[#allocation2 + $0x3b8] sm:$0xff]  ;;  %v668_v27 = vld [vmem:[#allocation2 + $0x3b0] sm:$0xff] }
  0x39   : > { %268 = vmatprep.subr.mxu0 %v211_v57  ;;  %381 = vmatprep.subr.mxu1 %v170_v58  ;;  %v2090_v23 = vld [vmem:[%s2072_s22 + $0x20] sm:$0xff]  ;;  %v496_v28 = vld [vmem:[#allocation2 + $0x2a8] sm:$0xff]  ;;  %v2097_v32 = vld [vmem:[%s2072_s22 + $0x31] sm:$0xff] }
  0x3a   : > { %269 = vmatpush1.msra.mxu0 %v210_v59  ;;  %382 = vmatpush1.msra.mxu1 %v169_v60  ;;  %v667_v29 = vld [vmem:[#allocation2 + $0x3a8] sm:$0xff]  ;;  %v495_v30 = vld [vmem:[#allocation2 + $0x2a0] sm:$0xff]  ;;  %v2100_v33 = vld [vmem:[%s2072_s22 + $0x30] sm:$0xff] }
  0x3b   : > { %270 = vmatprep.subr.mxu0 %v209_v61  ;;  %383 = vmatprep.subr.mxu1 %v168_v62  ;;  %v666_v31 = vld [vmem:[#allocation2 + $0x3a0] sm:$0xff]  ;;  %v494_v34 = vld [vmem:[#allocation2 + $0x298] sm:$0xff]  ;;  %v493_v36 = vld [vmem:[#allocation2 + $0x290] sm:$0xff] }
  0x3c   : > { %271 = vmatpush1.msra.mxu0 %v208_v63  ;;  %384 = vmatpush1.msra.mxu1 %v167_v1  ;;  %v665_v35 = vld [vmem:[#allocation2 + $0x398] sm:$0xff]  ;;  %v664_v37 = vld [vmem:[#allocation2 + $0x390] sm:$0xff]  ;;  %v492_v38 = vld [vmem:[#allocation2 + $0x288] sm:$0xff] }
  0x3d   : > { %305 = vmatmul.mubr.f32.vlgmr.msra.gmra.mxu0 %v199_v2  ;;  %418 = vmatmul.mubr.f32.vlgmr.msra.gmra.mxu1 %v159_v3  ;;  %v663_v39 = vld [vmem:[#allocation2 + $0x388] sm:$0xff]  ;;  %v491_v40 = vld [vmem:[#allocation2 + $0x280] sm:$0xff]  ;;  %v490_v44 = vld [vmem:[#allocation2 + $0x278] sm:$0xff] }
  0x3e   : > { %507 = vmatprep.subr.mxu0 %v506_v4  ;;  %678 = vmatprep.subr.mxu1 %v677_v5  ;;  %v662_v41 = vld [vmem:[#allocation2 + $0x380] sm:$0xff]  ;;  %v661_v45 = vld [vmem:[#allocation2 + $0x378] sm:$0xff]  ;;  %v489_v46 = vld [vmem:[#allocation2 + $0x270] sm:$0xff] }
  0x3f   : > { %508 = vmatpush1.msra.mxu0 %v505_v6  ;;  %679 = vmatpush1.msra.mxu1 %v676_v7  ;;  %v2107_v42 = vld [vmem:[%s2072_s22 + $0x41] sm:$0xff]  ;;  %v660_v47 = vld [vmem:[#allocation2 + $0x370] sm:$0xff]  ;;  %v486_v54 = vld [vmem:[#allocation2 + $0x258] sm:$0xff] }
  0x40   : > { %509 = vmatprep.subr.mxu0 %v504_v8  ;;  %680 = vmatprep.subr.mxu1 %v675_v9  ;;  %v2110_v43 = vld [vmem:[%s2072_s22 + $0x40] sm:$0xff]  ;;  %v488_v48 = vld [vmem:[#allocation2 + $0x268] sm:$0xff]  ;;  %v2117_v52 = vld [vmem:[%s2072_s22 + $0x51] sm:$0xff] }
  0x41   : > { %310 = vmatprep.mubr.f32.mxu0 %v2016_v0  ;;  %423 = vmatprep.mubr.f32.mxu1 %v2016_v0  ;;  %v659_v49 = vld [vmem:[#allocation2 + $0x368] sm:$0xff]  ;;  %v487_v50 = vld [vmem:[#allocation2 + $0x260] sm:$0xff]  ;;  %v2120_v53 = vld [vmem:[%s2072_s22 + $0x50] sm:$0xff] }
  0x42   : > { %510 = vmatpush1.msra.mxu0 %v503_v10  ;;  %681 = vmatpush1.msra.mxu1 %v674_v11  ;;  %v658_v51 = vld [vmem:[#allocation2 + $0x360] sm:$0xff]  ;;  %v657_v55 = vld [vmem:[#allocation2 + $0x358] sm:$0xff]  ;;  %v485_v56 = vld [vmem:[#allocation2 + $0x250] sm:$0xff] }
  0x43   : > { %311 = vmatmul.mubr.f32.gmra.mxu0 %v2077_v12  ;;  %424 = vmatmul.mubr.f32.gmra.mxu1 %v2080_v13  ;;  %v656_v57 = vld [vmem:[#allocation2 + $0x350] sm:$0xff]  ;;  %v484_v58 = vld [vmem:[#allocation2 + $0x248] sm:$0xff]  ;;  %v483_v60 = vld [vmem:[#allocation2 + $0x240] sm:$0xff] }
  0x44   : > { %511 = vmatprep.subr.mxu0 %v502_v14  ;;  %682 = vmatprep.subr.mxu1 %v673_v15  ;;  %v655_v59 = vld [vmem:[#allocation2 + $0x348] sm:$0xff]  ;;  %v654_v61 = vld [vmem:[#allocation2 + $0x340] sm:$0xff]  ;;  %v482_v1 = vld [vmem:[#allocation2 + $0x238] sm:$0xff] }
  0x45   : > { %512 = vmatpush1.msra.mxu0 %v501_v16  ;;  %683 = vmatpush1.msra.mxu1 %v672_v17  ;;  %v2127_v62 = vld [vmem:[%s2072_s22 + $0x61] sm:$0xff]  ;;  %v653_v2 = vld [vmem:[#allocation2 + $0x338] sm:$0xff]  ;;  %v481_v3 = vld [vmem:[#allocation2 + $0x230] sm:$0xff] }
  0x46   : > { %513 = vmatprep.subr.mxu0 %v500_v18  ;;  %684 = vmatprep.subr.mxu1 %v671_v19  ;;  %v2130_v63 = vld [vmem:[%s2072_s22 + $0x60] sm:$0xff]  ;;  %v652_v4 = vld [vmem:[#allocation2 + $0x330] sm:$0xff]  ;;  %v480_v5 = vld [vmem:[#allocation2 + $0x228] sm:$0xff] }
  0x47   : > { %316 = vmatprep.mubr.f32.mxu0 %v2016_v0  ;;  %429 = vmatprep.mubr.f32.mxu1 %v2016_v0  ;;  %v651_v6 = vld [vmem:[#allocation2 + $0x328] sm:$0xff]  ;;  %v479_v7 = vld [vmem:[#allocation2 + $0x220] sm:$0xff]  ;;  %v2137_v9 = vld [vmem:[%s2072_s22 + $0x71] sm:$0xff] }
  0x48   : > { %514 = vmatpush1.msra.mxu0 %v499_v20  ;;  %685 = vmatpush1.msra.mxu1 %v670_v21  ;;  %v650_v8 = vld [vmem:[#allocation2 + $0x320] sm:$0xff]  ;;  %v2140_v10 = vld [vmem:[%s2072_s22 + $0x70] sm:$0xff]  ;;  %v478_v11 = vld [vmem:[#allocation2 + $0x218] sm:$0xff] }
  0x49   : > { %317 = vmatmul.mubr.f32.gmra.mxu0 %v2087_v22  ;;  %430 = vmatmul.mubr.f32.gmra.mxu1 %v2090_v23  ;;  %v649_v14 = vld [vmem:[#allocation2 + $0x318] sm:$0xff]  ;;  %v477_v15 = vld [vmem:[#allocation2 + $0x210] sm:$0xff]  ;;  %v476_v17 = vld [vmem:[#allocation2 + $0x208] sm:$0xff] }
  0x4a   : > { %515 = vmatprep.subr.mxu0 %v498_v24  ;;  %686 = vmatprep.subr.mxu1 %v669_v25  ;;  %v648_v16 = vld [vmem:[#allocation2 + $0x310] sm:$0xff]  ;;  %v647_v18 = vld [vmem:[#allocation2 + $0x308] sm:$0xff]  ;;  %v475_v19 = vld [vmem:[#allocation2 + $0x200] sm:$0xff] }
  0x4b   : > { %516 = vmatpush1.msra.mxu0 %v497_v26  ;;  %687 = vmatpush1.msra.mxu1 %v668_v27  ;;  %v646_v20 = vld [vmem:[#allocation2 + $0x300] sm:$0xff]  ;;  %v847_v24 = vld [vmem:[#allocation2 + $0x4f8] sm:$0xff]  ;;  %v846_v26 = vld [vmem:[#allocation2 + $0x4f0] sm:$0xff] }
  0x4c   : > { %517 = vmatprep.subr.mxu0 %v496_v28  ;;  %688 = vmatprep.subr.mxu1 %v667_v29  ;;  %v466_v21 = vld [vmem:[%s2072_s22 + $0x2] sm:$0xff]  ;;  %v1017_v25 = vld [vmem:[#allocation2 + $0x5f8] sm:$0xff]  ;;  %v1016_v27 = vld [vmem:[#allocation2 + $0x5f0] sm:$0xff] }
  0x4d   : > { %322 = vmatprep.mubr.f32.mxu0 %v2016_v0  ;;  %435 = vmatprep.mubr.f32.mxu1 %v2016_v0  ;;  %v845_v28 = vld [vmem:[#allocation2 + $0x4e8] sm:$0xff] }
  0x4e   : > { %518 = vmatpush1.msra.mxu0 %v495_v30  ;;  %689 = vmatpush1.msra.mxu1 %v666_v31  ;;  %v1015_v29 = vld [vmem:[#allocation2 + $0x5e8] sm:$0xff]  ;;  %v844_v30 = vld [vmem:[#allocation2 + $0x4e0] sm:$0xff] }
  0x4f   : > { %323 = vmatmul.mubr.f32.gmra.mxu0 %v2097_v32  ;;  %436 = vmatmul.mubr.f32.gmra.mxu1 %v2100_v33  ;;  %v1014_v31 = vld [vmem:[#allocation2 + $0x5e0] sm:$0xff] }
  0x50   : > { %519 = vmatprep.subr.mxu0 %v494_v34  ;;  %690 = vmatprep.subr.mxu1 %v665_v35  ;;  %v2151_v34 = vld [vmem:[%s2072_s22 + $0x12] sm:$0xff] }
  0x51   : > { %520 = vmatpush1.msra.mxu0 %v493_v36  ;;  %691 = vmatpush1.msra.mxu1 %v664_v37  ;;  %v843_v35 = vld [vmem:[#allocation2 + $0x4d8] sm:$0xff]  ;;  %v1012_v37 = vld [vmem:[#allocation2 + $0x5d0] sm:$0xff] }
  0x52   : > { %521 = vmatprep.subr.mxu0 %v492_v38  ;;  %692 = vmatprep.subr.mxu1 %v663_v39  ;;  %v1013_v36 = vld [vmem:[#allocation2 + $0x5d8] sm:$0xff]  ;;  %v841_v38 = vld [vmem:[#allocation2 + $0x4c8] sm:$0xff] }
  0x53   : > { %328 = vmatprep.mubr.f32.mxu0 %v2016_v0  ;;  %441 = vmatprep.mubr.f32.mxu1 %v2016_v0  ;;  %v1011_v39 = vld [vmem:[#allocation2 + $0x5c8] sm:$0xff] }
  0x54   : > { %522 = vmatpush1.msra.mxu0 %v491_v40  ;;  %693 = vmatpush1.msra.mxu1 %v662_v41  ;;  %v840_v40 = vld [vmem:[#allocation2 + $0x4c0] sm:$0xff] }
  0x55   : > { %329 = vmatmul.mubr.f32.gmra.mxu0 %v2107_v42  ;;  %442 = vmatmul.mubr.f32.gmra.mxu1 %v2110_v43  ;;  %v1010_v41 = vld [vmem:[#allocation2 + $0x5c0] sm:$0xff] }
  0x56   : > { %523 = vmatprep.subr.mxu0 %v490_v44  ;;  %694 = vmatprep.subr.mxu1 %v661_v45  ;;  %v2158_v44 = vld [vmem:[%s2072_s22 + $0x22] sm:$0xff]  ;;  %v839_v45 = vld [vmem:[#allocation2 + $0x4b8] sm:$0xff] }
  0x57   : > { %524 = vmatpush1.msra.mxu0 %v489_v46  ;;  %695 = vmatpush1.msra.mxu1 %v660_v47  ;;  %v1009_v46 = vld [vmem:[#allocation2 + $0x5b8] sm:$0xff]  ;;  %v838_v47 = vld [vmem:[#allocation2 + $0x4b0] sm:$0xff] }
  0x58   : > { %525 = vmatprep.subr.mxu0 %v488_v48  ;;  %696 = vmatprep.subr.mxu1 %v659_v49  ;;  %v1008_v48 = vld [vmem:[#allocation2 + $0x5b0] sm:$0xff]  ;;  %v837_v49 = vld [vmem:[#allocation2 + $0x4a8] sm:$0xff] }
  0x59   : > { %334 = vmatprep.mubr.f32.mxu0 %v2016_v0  ;;  %447 = vmatprep.mubr.f32.mxu1 %v2016_v0 }
  0x5a   : > { %526 = vmatpush1.msra.mxu0 %v487_v50  ;;  %697 = vmatpush1.msra.mxu1 %v658_v51  ;;  %v1007_v50 = vld [vmem:[#allocation2 + $0x5a8] sm:$0xff]  ;;  %v836_v51 = vld [vmem:[#allocation2 + $0x4a0] sm:$0xff] }
  0x5b   : > { %335 = vmatmul.mubr.f32.gmra.mxu0 %v2117_v52  ;;  %448 = vmatmul.mubr.f32.gmra.mxu1 %v2120_v53 }
  0x5c   : > { %527 = vmatprep.subr.mxu0 %v486_v54  ;;  %698 = vmatprep.subr.mxu1 %v657_v55  ;;  %v1006_v54 = vld [vmem:[#allocation2 + $0x5a0] sm:$0xff]  ;;  %v2165_v55 = vld [vmem:[%s2072_s22 + $0x32] sm:$0xff] }
  0x5d   : > { %528 = vmatpush1.msra.mxu0 %v485_v56  ;;  %699 = vmatpush1.msra.mxu1 %v656_v57  ;;  %v835_v56 = vld [vmem:[#allocation2 + $0x498] sm:$0xff] }
  0x5e   : > { %529 = vmatprep.subr.mxu0 %v484_v58  ;;  %700 = vmatprep.subr.mxu1 %v655_v59  ;;  %v1005_v57 = vld [vmem:[#allocation2 + $0x598] sm:$0xff]  ;;  %v834_v58 = vld [vmem:[#allocation2 + $0x490] sm:$0xff] }
  0x5f   : > { %340 = vmatprep.mubr.f32.mxu0 %v2016_v0  ;;  %453 = vmatprep.mubr.f32.mxu1 %v2016_v0  ;;  %v1004_v59 = vld [vmem:[#allocation2 + $0x590] sm:$0xff] }
  0x60   : > { %530 = vmatpush1.msra.mxu0 %v483_v60  ;;  %701 = vmatpush1.msra.mxu1 %v654_v61  ;;  %v833_v60 = vld [vmem:[#allocation2 + $0x488] sm:$0xff] }
  0x61   : > { %341 = vmatmul.mubr.f32.gmra.mxu0 %v2127_v62  ;;  %454 = vmatmul.mubr.f32.gmra.mxu1 %v2130_v63  ;;  %v1003_v61 = vld [vmem:[#allocation2 + $0x588] sm:$0xff] }
  0x62   : > { %531 = vmatprep.subr.mxu0 %v482_v1  ;;  %702 = vmatprep.subr.mxu1 %v653_v2  ;;  %v832_v1 = vld [vmem:[#allocation2 + $0x480] sm:$0xff] }
  0x63   : > { %532 = vmatpush1.msra.mxu0 %v481_v3  ;;  %703 = vmatpush1.msra.mxu1 %v652_v4  ;;  %v1002_v2 = vld [vmem:[#allocation2 + $0x580] sm:$0xff]  ;;  %v831_v4 = vld [vmem:[#allocation2 + $0x478] sm:$0xff] }
  0x64   : > { %533 = vmatprep.subr.mxu0 %v480_v5  ;;  %704 = vmatprep.subr.mxu1 %v651_v6  ;;  %v2172_v3 = vld [vmem:[%s2072_s22 + $0x42] sm:$0xff]  ;;  %v1001_v5 = vld [vmem:[#allocation2 + $0x578] sm:$0xff]  ;;  %v830_v6 = vld [vmem:[#allocation2 + $0x470] sm:$0xff] }
  0x65   : > { %346 = vmatprep.mubr.f32.mxu0 %v2016_v0  ;;  %459 = vmatprep.mubr.f32.mxu1 %v2016_v0 }
  0x66   : > { %534 = vmatpush1.msra.mxu0 %v479_v7  ;;  %705 = vmatpush1.msra.mxu1 %v650_v8  ;;  %v1000_v7 = vld [vmem:[#allocation2 + $0x570] sm:$0xff]  ;;  %v829_v8 = vld [vmem:[#allocation2 + $0x468] sm:$0xff] }
  0x67   : > { %347 = vmatmul.mubr.f32.gmra.mxu0 %v2137_v9  ;;  %460 = vmatmul.mubr.f32.gmra.mxu1 %v2140_v10 }
  0x68   : > { %535 = vmatprep.subr.mxu0 %v478_v11  ;;  %706 = vmatprep.subr.mxu1 %v649_v14  ;;  %v999_v11 = vld [vmem:[#allocation2 + $0x568] sm:$0xff]  ;;  %v828_v14 = vld [vmem:[#allocation2 + $0x460] sm:$0xff] }
  0x69   : > { %536 = vmatpush1.msra.mxu0 %v477_v15  ;;  %707 = vmatpush1.msra.mxu1 %v648_v16  ;;  %v998_v15 = vld [vmem:[#allocation2 + $0x560] sm:$0xff]  ;;  %v2179_v16 = vld [vmem:[%s2072_s22 + $0x52] sm:$0xff] }
  0x6a   : > { %537 = vmatprep.subr.mxu0 %v476_v17  ;;  %708 = vmatprep.subr.mxu1 %v647_v18  ;;  %v827_v17 = vld [vmem:[#allocation2 + $0x458] sm:$0xff] }
  0x6b   : > { %538 = vmatpush1.msra.mxu0 %v475_v19  ;;  %571 = vmatprep.mubr.f32.mxu0 %v2016_v0  ;;  %v997_v18 = vld [vmem:[#allocation2 + $0x558] sm:$0xff]  ;;  %v826_v19 = vld [vmem:[#allocation2 + $0x450] sm:$0xff] }
  0x6c   : > { %709 = vmatpush1.msra.mxu1 %v646_v20  ;;  %742 = vmatprep.mubr.f32.mxu1 %v2016_v0  ;;  %v996_v20 = vld [vmem:[#allocation2 + $0x550] sm:$0xff] }
  0x6d   : > { %572 = vmatmul.mubr.f32.vlgmr.msra.gmra.mxu0 %v466_v21  ;;  %743 = vmatmul.mubr.f32.vlgmr.msra.gmra.mxu1 %v2080_v13  ;;  %v842_v13 = vld [vmem:[#allocation2 + $0x4d0] sm:$0xff]  ;;  %v825_v21 = vld [vmem:[#allocation2 + $0x448] sm:$0xff] }
  0x6e   : > { %848 = vmatprep.subr.mxu0 %v847_v24  ;;  %1018 = vmatprep.subr.mxu1 %v1017_v25  ;;  %v995_v24 = vld [vmem:[#allocation2 + $0x548] sm:$0xff]  ;;  %v824_v25 = vld [vmem:[#allocation2 + $0x440] sm:$0xff] }
  0x6f   : > { %849 = vmatpush1.msra.mxu0 %v846_v26  ;;  %1019 = vmatpush1.msra.mxu1 %v1016_v27  ;;  %v994_v26 = vld [vmem:[#allocation2 + $0x540] sm:$0xff] }
  0x70   : > { %850 = vmatprep.subr.mxu0 %v845_v28  ;;  %1020 = vmatprep.subr.mxu1 %v1015_v29  ;;  %v2186_v27 = vld [vmem:[%s2072_s22 + $0x62] sm:$0xff]  ;;  %v823_v28 = vld [vmem:[#allocation2 + $0x438] sm:$0xff] }
  0x71   : > { %577 = vmatprep.mubr.f32.mxu0 %v2016_v0  ;;  %748 = vmatprep.mubr.f32.mxu1 %v2016_v0  ;;  %v993_v29 = vld [vmem:[#allocation2 + $0x538] sm:$0xff] }
  0x72   : > { %851 = vmatpush1.msra.mxu0 %v844_v30  ;;  %1021 = vmatpush1.msra.mxu1 %v1014_v31  ;;  %v822_v30 = vld [vmem:[#allocation2 + $0x430] sm:$0xff] }
  0x73   : > { %578 = vmatmul.mubr.f32.gmra.mxu0 %v2151_v34  ;;  %749 = vmatmul.mubr.f32.gmra.mxu1 %v2090_v23  ;;  %v992_v31 = vld [vmem:[#allocation2 + $0x530] sm:$0xff] }
  0x74   : > { %852 = vmatprep.subr.mxu0 %v843_v35  ;;  %1022 = vmatprep.subr.mxu1 %v1013_v36  ;;  %v821_v35 = vld [vmem:[#allocation2 + $0x428] sm:$0xff] }
  0x75   : > { %853 = vmatpush1.msra.mxu0 %v842_v13  ;;  %1023 = vmatpush1.msra.mxu1 %v1012_v37  ;;  %v991_v36 = vld [vmem:[#allocation2 + $0x528] sm:$0xff]  ;;  %v820_v13 = vld [vmem:[#allocation2 + $0x420] sm:$0xff] }
  0x76   : > { %854 = vmatprep.subr.mxu0 %v841_v38  ;;  %1024 = vmatprep.subr.mxu1 %v1011_v39  ;;  %v990_v37 = vld [vmem:[#allocation2 + $0x520] sm:$0xff]  ;;  %v2193_v38 = vld [vmem:[%s2072_s22 + $0x72] sm:$0xff] }
  0x77   : > { %583 = vmatprep.mubr.f32.mxu0 %v2016_v0  ;;  %754 = vmatprep.mubr.f32.mxu1 %v2016_v0  ;;  %v2196_v39 = vld [vmem:[%s2072_s22 + $0x80] sm:$0xff] }
  0x78   : > { %855 = vmatpush1.msra.mxu0 %v840_v40  ;;  %1025 = vmatpush1.msra.mxu1 %v1010_v41  ;;  %v819_v40 = vld [vmem:[#allocation2 + $0x418] sm:$0xff] }
  0x79   : > { %584 = vmatmul.mubr.f32.gmra.mxu0 %v2158_v44  ;;  %755 = vmatmul.mubr.f32.gmra.mxu1 %v2100_v33  ;;  %v989_v41 = vld [vmem:[#allocation2 + $0x518] sm:$0xff] }
  0x7a   : > { %856 = vmatprep.subr.mxu0 %v839_v45  ;;  %1026 = vmatprep.subr.mxu1 %v1009_v46  ;;  %v818_v45 = vld [vmem:[#allocation2 + $0x410] sm:$0xff] }
  0x7b   : > { %857 = vmatpush1.msra.mxu0 %v838_v47  ;;  %1027 = vmatpush1.msra.mxu1 %v1008_v48  ;;  %v988_v46 = vld [vmem:[#allocation2 + $0x510] sm:$0xff]  ;;  %v817_v47 = vld [vmem:[#allocation2 + $0x408] sm:$0xff] }
  0x7c   : > { %858 = vmatprep.subr.mxu0 %v837_v49  ;;  %1028 = vmatprep.subr.mxu1 %v1007_v50  ;;  %v987_v48 = vld [vmem:[#allocation2 + $0x508] sm:$0xff]  ;;  %v816_v49 = vld [vmem:[#allocation2 + $0x400] sm:$0xff] }
  0x7d   : > { %589 = vmatprep.mubr.f32.mxu0 %v2016_v0  ;;  %760 = vmatprep.mubr.f32.mxu1 %v2016_v0  ;;  %v986_v50 = vld [vmem:[#allocation2 + $0x500] sm:$0xff] }
  0x7e   : > { %859 = vmatpush1.msra.mxu0 %v836_v51  ;;  %1029 = vmatpush1.msra.mxu1 %v1006_v54  ;;  %v1188_v51 = vld [vmem:[#allocation2 + $0x6f8] sm:$0xff] }
  0x7f   : > { %590 = vmatmul.mubr.f32.gmra.mxu0 %v2165_v55  ;;  %761 = vmatmul.mubr.f32.gmra.mxu1 %v2110_v43  ;;  %v1358_v54 = vld [vmem:[#allocation2 + $0x7f8] sm:$0xff] }
  0x80   : > { %860 = vmatprep.subr.mxu0 %v835_v56  ;;  %1030 = vmatprep.subr.mxu1 %v1005_v57  ;;  %v1187_v56 = vld [vmem:[#allocation2 + $0x6f0] sm:$0xff] }
  0x81   : > { %861 = vmatpush1.msra.mxu0 %v834_v58  ;;  %1031 = vmatpush1.msra.mxu1 %v1004_v59  ;;  %v1357_v57 = vld [vmem:[#allocation2 + $0x7f0] sm:$0xff]  ;;  %v1186_v58 = vld [vmem:[#allocation2 + $0x6e8] sm:$0xff] }
  0x82   : > { %862 = vmatprep.subr.mxu0 %v833_v60  ;;  %1032 = vmatprep.subr.mxu1 %v1003_v61  ;;  %v1356_v59 = vld [vmem:[#allocation2 + $0x7e8] sm:$0xff]  ;;  %v1185_v60 = vld [vmem:[#allocation2 + $0x6e0] sm:$0xff] }
  0x83   : > { %595 = vmatprep.mubr.f32.mxu0 %v2016_v0  ;;  %766 = vmatprep.mubr.f32.mxu1 %v2016_v0  ;;  %v1355_v61 = vld [vmem:[#allocation2 + $0x7e0] sm:$0xff] }
  0x84   : > { %863 = vmatpush1.msra.mxu0 %v832_v1  ;;  %1033 = vmatpush1.msra.mxu1 %v1002_v2  ;;  %v1184_v1 = vld [vmem:[#allocation2 + $0x6d8] sm:$0xff] }
  0x85   : > { %596 = vmatmul.mubr.f32.gmra.mxu0 %v2172_v3  ;;  %767 = vmatmul.mubr.f32.gmra.mxu1 %v2120_v53  ;;  %v1354_v2 = vld [vmem:[#allocation2 + $0x7d8] sm:$0xff] }
  0x86   : > { %864 = vmatprep.subr.mxu0 %v831_v4  ;;  %1034 = vmatprep.subr.mxu1 %v1001_v5  ;;  %v1182_v4 = vld [vmem:[#allocation2 + $0x6c8] sm:$0xff] }
  0x87   : > { %865 = vmatpush1.msra.mxu0 %v830_v6  ;;  %1035 = vmatpush1.msra.mxu1 %v1000_v7  ;;  %v1352_v5 = vld [vmem:[#allocation2 + $0x7c8] sm:$0xff]  ;;  %v1181_v6 = vld [vmem:[#allocation2 + $0x6c0] sm:$0xff] }
  0x88   : > { %866 = vmatprep.subr.mxu0 %v829_v8  ;;  %1036 = vmatprep.subr.mxu1 %v999_v11  ;;  %v1351_v7 = vld [vmem:[#allocation2 + $0x7c0] sm:$0xff]  ;;  %v1180_v8 = vld [vmem:[#allocation2 + $0x6b8] sm:$0xff] }
  0x89   : > { %601 = vmatprep.mubr.f32.mxu0 %v2016_v0  ;;  %772 = vmatprep.mubr.f32.mxu1 %v2016_v0  ;;  %v1350_v11 = vld [vmem:[#allocation2 + $0x7b8] sm:$0xff] }
  0x8a   : > { %867 = vmatpush1.msra.mxu0 %v828_v14  ;;  %1037 = vmatpush1.msra.mxu1 %v998_v15  ;;  %v1179_v14 = vld [vmem:[#allocation2 + $0x6b0] sm:$0xff] }
  0x8b   : > { %602 = vmatmul.mubr.f32.gmra.mxu0 %v2179_v16  ;;  %773 = vmatmul.mubr.f32.gmra.mxu1 %v2130_v63  ;;  %v1349_v15 = vld [vmem:[#allocation2 + $0x7b0] sm:$0xff] }
  0x8c   : > { %868 = vmatprep.subr.mxu0 %v827_v17  ;;  %1038 = vmatprep.subr.mxu1 %v997_v18  ;;  %v1178_v17 = vld [vmem:[#allocation2 + $0x6a8] sm:$0xff] }
  0x8d   : > { %869 = vmatpush1.msra.mxu0 %v826_v19  ;;  %1039 = vmatpush1.msra.mxu1 %v996_v20  ;;  %v1348_v18 = vld [vmem:[#allocation2 + $0x7a8] sm:$0xff]  ;;  %v1177_v19 = vld [vmem:[#allocation2 + $0x6a0] sm:$0xff] }
  0x8e   : > { %870 = vmatprep.subr.mxu0 %v825_v21  ;;  %1040 = vmatprep.subr.mxu1 %v995_v24  ;;  %v1347_v20 = vld [vmem:[#allocation2 + $0x7a0] sm:$0xff]  ;;  %v1176_v21 = vld [vmem:[#allocation2 + $0x698] sm:$0xff] }
  0x8f   : > { %607 = vmatprep.mubr.f32.mxu0 %v2016_v0  ;;  %778 = vmatprep.mubr.f32.mxu1 %v2016_v0  ;;  %v1346_v24 = vld [vmem:[#allocation2 + $0x798] sm:$0xff] }
  0x90   : > { %871 = vmatpush1.msra.mxu0 %v824_v25  ;;  %1041 = vmatpush1.msra.mxu1 %v994_v26  ;;  %v1175_v25 = vld [vmem:[#allocation2 + $0x690] sm:$0xff] }
  0x91   : > { %608 = vmatmul.mubr.f32.gmra.mxu0 %v2186_v27  ;;  %779 = vmatmul.mubr.f32.gmra.mxu1 %v2140_v10  ;;  %v1345_v26 = vld [vmem:[#allocation2 + $0x790] sm:$0xff] }
  0x92   : > { %872 = vmatprep.subr.mxu0 %v823_v28  ;;  %1042 = vmatprep.subr.mxu1 %v993_v29  ;;  %v1174_v28 = vld [vmem:[#allocation2 + $0x688] sm:$0xff] }
  0x93   : > { %873 = vmatpush1.msra.mxu0 %v822_v30  ;;  %1043 = vmatpush1.msra.mxu1 %v992_v31  ;;  %v1344_v29 = vld [vmem:[#allocation2 + $0x788] sm:$0xff]  ;;  %v1173_v30 = vld [vmem:[#allocation2 + $0x680] sm:$0xff] }
  0x94   : > { %874 = vmatprep.subr.mxu0 %v821_v35  ;;  %1044 = vmatprep.subr.mxu1 %v991_v36  ;;  %v1343_v31 = vld [vmem:[#allocation2 + $0x780] sm:$0xff]  ;;  %v1172_v35 = vld [vmem:[#allocation2 + $0x678] sm:$0xff] }
  0x95   : > { %613 = vmatprep.mubr.f32.mxu0 %v2016_v0  ;;  %784 = vmatprep.mubr.f32.mxu1 %v2016_v0  ;;  %v1342_v36 = vld [vmem:[#allocation2 + $0x778] sm:$0xff] }
  0x96   : > { %875 = vmatpush1.msra.mxu0 %v820_v13  ;;  %1045 = vmatpush1.msra.mxu1 %v990_v37  ;;  %v1171_v13 = vld [vmem:[#allocation2 + $0x670] sm:$0xff] }
  0x97   : > { %614 = vmatmul.mubr.f32.gmra.mxu0 %v2193_v38  ;;  %785 = vmatmul.mubr.f32.gmra.mxu1 %v2196_v39  ;;  %v1341_v37 = vld [vmem:[#allocation2 + $0x770] sm:$0xff] }
  0x98   : > { %876 = vmatprep.subr.mxu0 %v819_v40  ;;  %1046 = vmatprep.subr.mxu1 %v989_v41  ;;  %v1170_v40 = vld [vmem:[#allocation2 + $0x668] sm:$0xff] }
  0x99   : > { %877 = vmatpush1.msra.mxu0 %v818_v45  ;;  %1047 = vmatpush1.msra.mxu1 %v988_v46  ;;  %v1340_v41 = vld [vmem:[#allocation2 + $0x768] sm:$0xff]  ;;  %v1169_v45 = vld [vmem:[#allocation2 + $0x660] sm:$0xff] }
  0x9a   : > { %878 = vmatprep.subr.mxu0 %v817_v47  ;;  %1048 = vmatprep.subr.mxu1 %v987_v48  ;;  %v1339_v46 = vld [vmem:[#allocation2 + $0x760] sm:$0xff]  ;;  %v1168_v47 = vld [vmem:[#allocation2 + $0x658] sm:$0xff] }
  0x9b   : > { %879 = vmatpush1.msra.mxu0 %v816_v49  ;;  %912 = vmatprep.mubr.f32.mxu0 %v2016_v0  ;;  %v1338_v48 = vld [vmem:[#allocation2 + $0x758] sm:$0xff]  ;;  %v1167_v49 = vld [vmem:[#allocation2 + $0x650] sm:$0xff] }
  0x9c   : > { %1049 = vmatpush1.msra.mxu1 %v986_v50  ;;  %1082 = vmatprep.mubr.f32.mxu1 %v2016_v0  ;;  %v1337_v50 = vld [vmem:[#allocation2 + $0x750] sm:$0xff] }
  0x9d   : > { %913 = vmatmul.mubr.f32.vlgmr.msra.gmra.mxu0 %v2077_v12  ;;  %1083 = vmatmul.mubr.f32.vlgmr.msra.gmra.mxu1 %v2151_v34  ;;  %v1183_v12 = vld [vmem:[#allocation2 + $0x6d0] sm:$0xff] }
  0x9e   : > { %1189 = vmatprep.subr.mxu0 %v1188_v51  ;;  %1359 = vmatprep.subr.mxu1 %v1358_v54  ;;  %v1353_v34 = vld [vmem:[#allocation2 + $0x7d0] sm:$0xff]  ;;  %v1166_v51 = vld [vmem:[#allocation2 + $0x648] sm:$0xff] }
  0x9f   : > { %1190 = vmatpush1.msra.mxu0 %v1187_v56  ;;  %1360 = vmatpush1.msra.mxu1 %v1357_v57  ;;  %v1336_v54 = vld [vmem:[#allocation2 + $0x748] sm:$0xff]  ;;  %v1165_v56 = vld [vmem:[#allocation2 + $0x640] sm:$0xff] }
  0xa0   : > { %1191 = vmatprep.subr.mxu0 %v1186_v58  ;;  %1361 = vmatprep.subr.mxu1 %v1356_v59  ;;  %v1335_v57 = vld [vmem:[#allocation2 + $0x740] sm:$0xff]  ;;  %v1164_v58 = vld [vmem:[#allocation2 + $0x638] sm:$0xff] }
  0xa1   : > { %918 = vmatprep.mubr.f32.mxu0 %v2016_v0  ;;  %1088 = vmatprep.mubr.f32.mxu1 %v2016_v0  ;;  %v1334_v59 = vld [vmem:[#allocation2 + $0x738] sm:$0xff] }
  0xa2   : > { %1192 = vmatpush1.msra.mxu0 %v1185_v60  ;;  %1362 = vmatpush1.msra.mxu1 %v1355_v61  ;;  %v1163_v60 = vld [vmem:[#allocation2 + $0x630] sm:$0xff] }
  0xa3   : > { %919 = vmatmul.mubr.f32.gmra.mxu0 %v2087_v22  ;;  %1089 = vmatmul.mubr.f32.gmra.mxu1 %v2158_v44  ;;  %v1333_v61 = vld [vmem:[#allocation2 + $0x730] sm:$0xff] }
  0xa4   : > { %1193 = vmatprep.subr.mxu0 %v1184_v1  ;;  %1363 = vmatprep.subr.mxu1 %v1354_v2  ;;  %v1162_v1 = vld [vmem:[#allocation2 + $0x628] sm:$0xff] }
  0xa5   : > { %1194 = vmatpush1.msra.mxu0 %v1183_v12  ;;  %1364 = vmatpush1.msra.mxu1 %v1353_v34  ;;  %v1332_v2 = vld [vmem:[#allocation2 + $0x728] sm:$0xff]  ;;  %v1161_v12 = vld [vmem:[#allocation2 + $0x620] sm:$0xff] }
  0xa6   : > { %1195 = vmatprep.subr.mxu0 %v1182_v4  ;;  %1365 = vmatprep.subr.mxu1 %v1352_v5  ;;  %v1331_v34 = vld [vmem:[#allocation2 + $0x720] sm:$0xff] }
  0xa7   : > { %924 = vmatprep.mubr.f32.mxu0 %v2016_v0  ;;  %1094 = vmatprep.mubr.f32.mxu1 %v2016_v0  ;;  %v2231_v4 = vld [vmem:[%s2072_s22 + $0x81] sm:$0xff] }
  0xa8   : > { %1196 = vmatpush1.msra.mxu0 %v1181_v6  ;;  %1366 = vmatpush1.msra.mxu1 %v1351_v7  ;;  %v2234_v5 = vld [vmem:[%s2072_s22 + $0x82] sm:$0xff]  ;;  %v1160_v6 = vld [vmem:[#allocation2 + $0x618] sm:$0xff] }
  0xa9   : > { %925 = vmatmul.mubr.f32.gmra.mxu0 %v2097_v32  ;;  %1095 = vmatmul.mubr.f32.gmra.mxu1 %v2165_v55  ;;  %v1330_v7 = vld [vmem:[#allocation2 + $0x718] sm:$0xff] }
  0xaa   : > { %1197 = vmatprep.subr.mxu0 %v1180_v8  ;;  %1367 = vmatprep.subr.mxu1 %v1350_v11  ;;  %v1159_v8 = vld [vmem:[#allocation2 + $0x610] sm:$0xff] }
  0xab   : > { %1198 = vmatpush1.msra.mxu0 %v1179_v14  ;;  %1368 = vmatpush1.msra.mxu1 %v1349_v15  ;;  %v1329_v11 = vld [vmem:[#allocation2 + $0x710] sm:$0xff]  ;;  %v1158_v14 = vld [vmem:[#allocation2 + $0x608] sm:$0xff] }
  0xac   : > { %1199 = vmatprep.subr.mxu0 %v1178_v17  ;;  %1369 = vmatprep.subr.mxu1 %v1348_v18  ;;  %v1328_v15 = vld [vmem:[#allocation2 + $0x708] sm:$0xff]  ;;  %v1157_v17 = vld [vmem:[#allocation2 + $0x600] sm:$0xff] }
  0xad   : > { %930 = vmatprep.mubr.f32.mxu0 %v2016_v0  ;;  %1100 = vmatprep.mubr.f32.mxu1 %v2016_v0  ;;  %v1327_v18 = vld [vmem:[#allocation2 + $0x700] sm:$0xff] }
  0xae   : > { %1200 = vmatpush1.msra.mxu0 %v1177_v19  ;;  %1370 = vmatpush1.msra.mxu1 %v1347_v20  ;;  %v1528_v19 = vld [vmem:[#allocation2 + $0x8f8] sm:$0xff]  ;;  %v1527_v20 = vld [vmem:[#allocation2 + $0x8f0] sm:$0xff] }
  0xaf   : > { %931 = vmatmul.mubr.f32.gmra.mxu0 %v2107_v42  ;;  %1101 = vmatmul.mubr.f32.gmra.mxu1 %v2172_v3 }
  0xb0   : > { %1201 = vmatprep.subr.mxu0 %v1176_v21  ;;  %1371 = vmatprep.subr.mxu1 %v1346_v24  ;;  %v1526_v21 = vld [vmem:[#allocation2 + $0x8e8] sm:$0xff]  ;;  %v1525_v24 = vld [vmem:[#allocation2 + $0x8e0] sm:$0xff] }
  0xb1   : > { %1202 = vmatpush1.msra.mxu0 %v1175_v25  ;;  %1372 = vmatpush1.msra.mxu1 %v1345_v26  ;;  %v1524_v25 = vld [vmem:[#allocation2 + $0x8d8] sm:$0xff]  ;;  %v1523_v26 = vld [vmem:[#allocation2 + $0x8d0] sm:$0xff] }
  0xb2   : > { %1203 = vmatprep.subr.mxu0 %v1174_v28  ;;  %1373 = vmatprep.subr.mxu1 %v1344_v29  ;;  %v1520_v28 = vld [vmem:[#allocation2 + $0x8b8] sm:$0xff]  ;;  %v1519_v29 = vld [vmem:[#allocation2 + $0x8b0] sm:$0xff] }
  0xb3   : > { %936 = vmatprep.mubr.f32.mxu0 %v2016_v0  ;;  %1106 = vmatprep.mubr.f32.mxu1 %v2016_v0 }
  0xb4   : > { %1204 = vmatpush1.msra.mxu0 %v1173_v30  ;;  %1374 = vmatpush1.msra.mxu1 %v1343_v31  ;;  %v1516_v30 = vld [vmem:[#allocation2 + $0x898] sm:$0xff]  ;;  %v1515_v31 = vld [vmem:[#allocation2 + $0x890] sm:$0xff] }
  0xb5   : > { %937 = vmatmul.mubr.f32.gmra.mxu0 %v2117_v52  ;;  %1107 = vmatmul.mubr.f32.gmra.mxu1 %v2179_v16 }
  0xb6   : > { %1205 = vmatprep.subr.mxu0 %v1172_v35  ;;  %1375 = vmatprep.subr.mxu1 %v1342_v36  ;;  %v1512_v35 = vld [vmem:[#allocation2 + $0x878] sm:$0xff]  ;;  %v1511_v36 = vld [vmem:[#allocation2 + $0x870] sm:$0xff] }
  0xb7   : > { %1206 = vmatpush1.msra.mxu0 %v1171_v13  ;;  %1376 = vmatpush1.msra.mxu1 %v1341_v37  ;;  %v1508_v13 = vld [vmem:[#allocation2 + $0x858] sm:$0xff]  ;;  %v1507_v37 = vld [vmem:[#allocation2 + $0x850] sm:$0xff] }
  0xb8   : > { %1207 = vmatprep.subr.mxu0 %v1170_v40  ;;  %1377 = vmatprep.subr.mxu1 %v1340_v41  ;;  %v1504_v40 = vld [vmem:[#allocation2 + $0x838] sm:$0xff]  ;;  %v1501_v41 = vld [vmem:[#allocation2 + $0x820] sm:$0xff] }
  0xb9   : > { %942 = vmatprep.mubr.f32.mxu0 %v2016_v0  ;;  %1112 = vmatprep.mubr.f32.mxu1 %v2016_v0 }
  0xba   : > { %1208 = vmatpush1.msra.mxu0 %v1169_v45  ;;  %1378 = vmatpush1.msra.mxu1 %v1339_v46  ;;  %v1900_v45 = vld [vmem:[%s2072_s22 + $0x90] sm:$0xff] }
  0xbb   : > { %943 = vmatmul.mubr.f32.gmra.mxu0 %v2127_v62  ;;  %1113 = vmatmul.mubr.f32.gmra.mxu1 %v2186_v27  ;;  %v1908_v46 = vld [vmem:[%s2072_s22 + $0x91] sm:$0xff] }
  0xbc   : > { %1209 = vmatprep.subr.mxu0 %v1168_v47  ;;  %1379 = vmatprep.subr.mxu1 %v1338_v48  ;;  %v1500_v47 = vld [vmem:[#allocation2 + $0x818] sm:$0xff]  ;;  %v1498_v48 = vld [vmem:[#allocation2 + $0x808] sm:$0xff] }
  0xbd   : > { %1210 = vmatpush1.msra.mxu0 %v1167_v49  ;;  %1380 = vmatpush1.msra.mxu1 %v1337_v50  ;;  %v1497_v49 = vld [vmem:[#allocation2 + $0x800] sm:$0xff] }
  0xbe   : > { %1211 = vmatprep.subr.mxu0 %v1166_v51  ;;  %1381 = vmatprep.subr.mxu1 %v1336_v54 }
  0xbf   : > { %948 = vmatprep.mubr.f32.mxu0 %v2016_v0  ;;  %1118 = vmatprep.mubr.f32.mxu1 %v2016_v0 }
  0xc0   : > { %1212 = vmatpush1.msra.mxu0 %v1165_v56  ;;  %1382 = vmatpush1.msra.mxu1 %v1335_v57 }
  0xc1   : > { %949 = vmatmul.mubr.f32.gmra.mxu0 %v2137_v9  ;;  %1119 = vmatmul.mubr.f32.gmra.mxu1 %v2193_v38 }
  0xc2   : > { %1213 = vmatprep.subr.mxu0 %v1164_v58  ;;  %1383 = vmatprep.subr.mxu1 %v1334_v59 }
  0xc3   : > { %1214 = vmatpush1.msra.mxu0 %v1163_v60  ;;  %1384 = vmatpush1.msra.mxu1 %v1333_v61 }
  0xc4   : > { %1215 = vmatprep.subr.mxu0 %v1162_v1  ;;  %1385 = vmatprep.subr.mxu1 %v1332_v2 }
  0xc5   : > { %954 = vmatprep.mubr.f32.mxu0 %v2016_v0  ;;  %1124 = vmatprep.mubr.f32.mxu1 %v2016_v0 }
  0xc6   : > { %1216 = vmatpush1.msra.mxu0 %v1161_v12  ;;  %1386 = vmatpush1.msra.mxu1 %v1331_v34 }
  0xc7   : > { %955 = vmatmul.mubr.f32.gmra.mxu0 %v2231_v4  ;;  %1125 = vmatmul.mubr.f32.gmra.mxu1 %v2234_v5 }
  0xc8   : > { %1217 = vmatprep.subr.mxu0 %v1160_v6  ;;  %1387 = vmatprep.subr.mxu1 %v1330_v7 }
  0xc9   : > { %1218 = vmatpush1.msra.mxu0 %v1159_v8  ;;  %1388 = vmatpush1.msra.mxu1 %v1329_v11 }
  0xca   : > { %1219 = vmatprep.subr.mxu0 %v1158_v14  ;;  %1389 = vmatprep.subr.mxu1 %v1328_v15 }
  0xcb   : > { %1220 = vmatpush1.msra.mxu0 %v1157_v17  ;;  %1253 = vmatprep.mubr.f32.mxu0 %v2016_v0 }
  0xcc   : > { %1390 = vmatpush1.msra.mxu1 %v1327_v18  ;;  %1423 = vmatprep.mubr.f32.mxu1 %v2016_v0 }
  0xcd   : > { %1254 = vmatmul.mubr.f32.vlgmr.msra.gmra.mxu0 %v2090_v23  ;;  %1424 = vmatmul.mubr.f32.vlgmr.msra.gmra.mxu1 %v2087_v22  ;;  %v1522_v22 = vld [vmem:[#allocation2 + $0x8c8] sm:$0xff]  ;;  %v1521_v23 = vld [vmem:[#allocation2 + $0x8c0] sm:$0xff] }
  0xce   : > { %1529 = vmatprep.subr.mxu0 %v1528_v19  ;;  %1919 = vmatprep.subr.mxu1 %v1528_v19 }
  0xcf   : > { %1530 = vmatpush1.msra.mxu0 %v1527_v20  ;;  %1935 = vmatpush1.msra.mxu1 %v1527_v20 }
  0xd0   : > { %1531 = vmatprep.subr.mxu0 %v1526_v21  ;;  %1920 = vmatprep.subr.mxu1 %v1526_v21 }
  0xd1   : > { %1259 = vmatprep.mubr.f32.mxu0 %v2016_v0  ;;  %1429 = vmatprep.mubr.f32.mxu1 %v2016_v0 }
  0xd2   : > { %1532 = vmatpush1.msra.mxu0 %v1525_v24  ;;  %1936 = vmatpush1.msra.mxu1 %v1525_v24 }
  0xd3   : > { %1260 = vmatmul.mubr.f32.gmra.mxu0 %v2100_v33  ;;  %1430 = vmatmul.mubr.f32.gmra.mxu1 %v2097_v32  ;;  %v1518_v32 = vld [vmem:[#allocation2 + $0x8a8] sm:$0xff]  ;;  %v1517_v33 = vld [vmem:[#allocation2 + $0x8a0] sm:$0xff] }
  0xd4   : > { %1533 = vmatprep.subr.mxu0 %v1524_v25  ;;  %1921 = vmatprep.subr.mxu1 %v1524_v25 }
  0xd5   : > { %1534 = vmatpush1.msra.mxu0 %v1523_v26  ;;  %1937 = vmatpush1.msra.mxu1 %v1523_v26 }
  0xd6   : > { %1535 = vmatprep.subr.mxu0 %v1522_v22  ;;  %1922 = vmatprep.subr.mxu1 %v1522_v22 }
  0xd7   : > { %1265 = vmatprep.mubr.f32.mxu0 %v2016_v0  ;;  %1435 = vmatprep.mubr.f32.mxu1 %v2016_v0 }
  0xd8   : > { %1536 = vmatpush1.msra.mxu0 %v1521_v23  ;;  %1938 = vmatpush1.msra.mxu1 %v1521_v23 }
  0xd9   : > { %1266 = vmatmul.mubr.f32.gmra.mxu0 %v2110_v43  ;;  %1436 = vmatmul.mubr.f32.gmra.mxu1 %v2107_v42  ;;  %v1514_v42 = vld [vmem:[#allocation2 + $0x888] sm:$0xff]  ;;  %v1513_v43 = vld [vmem:[#allocation2 + $0x880] sm:$0xff] }
  0xda   : > { %1537 = vmatprep.subr.mxu0 %v1520_v28  ;;  %1923 = vmatprep.subr.mxu1 %v1520_v28 }
  0xdb   : > { %1538 = vmatpush1.msra.mxu0 %v1519_v29  ;;  %1939 = vmatpush1.msra.mxu1 %v1519_v29 }
  0xdc   : > { %1539 = vmatprep.subr.mxu0 %v1518_v32  ;;  %1924 = vmatprep.subr.mxu1 %v1518_v32 }
  0xdd   : > { %1271 = vmatprep.mubr.f32.mxu0 %v2016_v0  ;;  %1441 = vmatprep.mubr.f32.mxu1 %v2016_v0 }
  0xde   : > { %1540 = vmatpush1.msra.mxu0 %v1517_v33  ;;  %1940 = vmatpush1.msra.mxu1 %v1517_v33 }
  0xdf   : > { %1272 = vmatmul.mubr.f32.gmra.mxu0 %v2120_v53  ;;  %1442 = vmatmul.mubr.f32.gmra.mxu1 %v2117_v52  ;;  %v1510_v52 = vld [vmem:[#allocation2 + $0x868] sm:$0xff]  ;;  %v1509_v53 = vld [vmem:[#allocation2 + $0x860] sm:$0xff] }
  0xe0   : > { %1541 = vmatprep.subr.mxu0 %v1516_v30  ;;  %1925 = vmatprep.subr.mxu1 %v1516_v30 }
  0xe1   : > { %1542 = vmatpush1.msra.mxu0 %v1515_v31  ;;  %1941 = vmatpush1.msra.mxu1 %v1515_v31 }
  0xe2   : > { %1543 = vmatprep.subr.mxu0 %v1514_v42  ;;  %1926 = vmatprep.subr.mxu1 %v1514_v42 }
  0xe3   : > { %1277 = vmatprep.mubr.f32.mxu0 %v2016_v0  ;;  %1447 = vmatprep.mubr.f32.mxu1 %v2016_v0 }
  0xe4   : > { %1544 = vmatpush1.msra.mxu0 %v1513_v43  ;;  %1942 = vmatpush1.msra.mxu1 %v1513_v43 }
  0xe5   : > { %1278 = vmatmul.mubr.f32.gmra.mxu0 %v2130_v63  ;;  %1448 = vmatmul.mubr.f32.gmra.mxu1 %v2127_v62  ;;  %v1506_v62 = vld [vmem:[#allocation2 + $0x848] sm:$0xff]  ;;  %v1505_v63 = vld [vmem:[#allocation2 + $0x840] sm:$0xff] }
  0xe6   : > { %1545 = vmatprep.subr.mxu0 %v1512_v35  ;;  %1927 = vmatprep.subr.mxu1 %v1512_v35 }
  0xe7   : > { %1546 = vmatpush1.msra.mxu0 %v1511_v36  ;;  %1943 = vmatpush1.msra.mxu1 %v1511_v36 }
  0xe8   : > { %1547 = vmatprep.subr.mxu0 %v1510_v52  ;;  %1928 = vmatprep.subr.mxu1 %v1510_v52 }
  0xe9   : > { %1283 = vmatprep.mubr.f32.mxu0 %v2016_v0  ;;  %1453 = vmatprep.mubr.f32.mxu1 %v2016_v0 }
  0xea   : > { %1548 = vmatpush1.msra.mxu0 %v1509_v53  ;;  %1944 = vmatpush1.msra.mxu1 %v1509_v53 }
  0xeb   : > { %1284 = vmatmul.mubr.f32.gmra.mxu0 %v2140_v10  ;;  %1454 = vmatmul.mubr.f32.gmra.mxu1 %v2137_v9  ;;  %v1503_v10 = vld [vmem:[#allocation2 + $0x830] sm:$0xff]  ;;  %v1502_v9 = vld [vmem:[#allocation2 + $0x828] sm:$0xff] }
  0xec   : > { %1549 = vmatprep.subr.mxu0 %v1508_v13  ;;  %1929 = vmatprep.subr.mxu1 %v1508_v13 }
  0xed   : > { %1550 = vmatpush1.msra.mxu0 %v1507_v37  ;;  %1945 = vmatpush1.msra.mxu1 %v1507_v37 }
  0xee   : > { %1551 = vmatprep.subr.mxu0 %v1506_v62  ;;  %1930 = vmatprep.subr.mxu1 %v1506_v62 }
  0xef   : > { %1289 = vmatprep.mubr.f32.mxu0 %v2016_v0  ;;  %1459 = vmatprep.mubr.f32.mxu1 %v2016_v0 }
  0xf0   : > { %1552 = vmatpush1.msra.mxu0 %v1505_v63  ;;  %1946 = vmatpush1.msra.mxu1 %v1505_v63 }
  0xf1   : > { %1290 = vmatmul.mubr.f32.gmra.mxu0 %v2196_v39  ;;  %1460 = vmatmul.mubr.f32.gmra.mxu1 %v2231_v4  ;;  %v1499_v39 = vld [vmem:[#allocation2 + $0x810] sm:$0xff] }
  0xf2   : > { %1553 = vmatprep.subr.mxu0 %v1504_v40  ;;  %1931 = vmatprep.subr.mxu1 %v1504_v40 }
  0xf3   : > { %1554 = vmatpush1.msra.mxu0 %v1503_v10  ;;  %1947 = vmatpush1.msra.mxu1 %v1503_v10 }
  0xf4   : > { %1555 = vmatprep.subr.mxu0 %v1502_v9  ;;  %1932 = vmatprep.subr.mxu1 %v1502_v9 }
  0xf5   : > { %1295 = vmatprep.mubr.f32.mxu0 %v2016_v0  ;;  %1465 = vmatprep.mubr.f32.mxu1 %v2016_v0 }
  0xf6   : > { %1556 = vmatpush1.msra.mxu0 %v1501_v41  ;;  %1948 = vmatpush1.msra.mxu1 %v1501_v41 }
  0xf7   : > { %1296 = vmatmul.mubr.f32.gmra.mxu0 %v1900_v45  ;;  %1466 = vmatmul.mubr.f32.gmra.mxu1 %v1908_v46 }
  0xf8   : > { %1557 = vmatprep.subr.mxu0 %v1500_v47  ;;  %1933 = vmatprep.subr.mxu1 %v1500_v47 }
  0xf9   : > { %1558 = vmatpush1.msra.mxu0 %v1499_v39  ;;  %1949 = vmatpush1.msra.mxu1 %v1499_v39 }
  0xfa   : > { %1559 = vmatprep.subr.mxu0 %v1498_v48  ;;  %1934 = vmatprep.subr.mxu1 %v1498_v48 }
  0xfb   : > { %1560 = vmatpush1.msra.mxu0 %v1497_v49  ;;  %1950 = vmatpush1.msra.mxu1 %v1497_v49 }
  0xfc   : > { %1593 = vmatprep.mubr.f32.mxu0 %v2016_v0  ;;  %1617 = vmatprep.mubr.f32.mxu1 %v2016_v0 }
  0xfd   : > { %1594 = vmatmul.mubr.f32.vlgmr.msra.gmra.mxu0 %v2158_v44  ;;  %1618 = vmatmul.mubr.f32.vlgmr.msra.gmra.mxu1 %v2186_v27  ;;  %v306_v50 = vpop.f32.mrf.mxu0  ;;  %v419_v51 = vpop.f32.mrf.mxu1 }
  0xfe   : > { %1599 = vmatprep.mubr.f32.mxu0 %v2016_v0  ;;  %1623 = vmatprep.mubr.f32.mxu1 %v2016_v0  ;;  %v420_v54 = vadd.f32 %v419_v51, %v306_v50 }
  0xff   : > { %v308_v56 = vpop.f32.mrf.mxu0  ;;  %v421_v57 = vpop.f32.mrf.mxu1 }
 0x100   : > { %v422_v58 = vadd.f32 %v421_v57, %v308_v56 }
 0x101   : > { %1600 = vmatmul.mubr.f32.gmra.mxu0 %v2165_v55  ;;  %1624 = vmatmul.mubr.f32.gmra.mxu1 %v2193_v38  ;;  %v1916_v55 = vld [vmem:[%s2072_s22 + $0x92] sm:$0xff] }
 0x102   : > { %1605 = vmatprep.mubr.f32.mxu0 %v2016_v0  ;;  %1629 = vmatprep.mubr.f32.mxu1 %v2016_v0 }
 0x103   : > { %v312_v44 = vpop.f32.mrf.mxu0  ;;  %v425_v27 = vpop.f32.mrf.mxu1 }
 0x104   : > { %v426_v59 = vadd.f32 %v425_v27, %v312_v44 }
 0x105   : > { %1606 = vmatmul.mubr.f32.gmra.mxu0 %v2172_v3  ;;  %1630 = vmatmul.mubr.f32.gmra.mxu1 %v2234_v5  ;;  %v314_v60 = vpop.f32.mrf.mxu0  ;;  %v427_v61 = vpop.f32.mrf.mxu1 }
 0x106   : > { %1611 = vmatprep.mubr.f32.mxu0 %v2016_v0  ;;  %1635 = vmatprep.mubr.f32.mxu1 %v2016_v0  ;;  %v428_v1 = vadd.f32 %v427_v61, %v314_v60 }
 0x109   : > { %1612 = vmatmul.mubr.f32.gmra.mxu0 %v2179_v16  ;;  %1636 = vmatmul.mubr.f32.gmra.mxu1 %v1916_v55  ;;  %v318_v38 = vpop.f32.mrf.mxu0  ;;  %v431_v2 = vpop.f32.mrf.mxu1 }
 0x10a   : > { %v432_v12 = vadd.f32 %v431_v2, %v318_v38 }
 0x10b   : > { %v320_v34 = vpop.f32.mrf.mxu0  ;;  %v433_v4 = vpop.f32.mrf.mxu1 }
 0x10c   : > { %v434_v6 = vadd.f32 %v433_v4, %v320_v34 }
 0x10f   : > { %v324_v3 = vpop.f32.mrf.mxu0  ;;  %v437_v7 = vpop.f32.mrf.mxu1 }
 0x110   : > { %v438_v5 = vadd.f32 %v437_v7, %v324_v3 }
 0x111   : > { %v326_v8 = vpop.f32.mrf.mxu0  ;;  %v439_v11 = vpop.f32.mrf.mxu1 }
 0x112   : > { %v440_v14 = vadd.f32 %v439_v11, %v326_v8 }
 0x115   : > { %v330_v15 = vpop.f32.mrf.mxu0  ;;  %v443_v17 = vpop.f32.mrf.mxu1 }
 0x116   : > { %v444_v0 = vadd.f32 %v443_v17, %v330_v15 }
 0x117   : > { %v332_v18 = vpop.f32.mrf.mxu0  ;;  %v445_v19 = vpop.f32.mrf.mxu1 }
 0x118   : > { %v446_v20 = vadd.f32 %v445_v19, %v332_v18 }
 0x11b   : > { %v336_v16 = vpop.f32.mrf.mxu0  ;;  %v449_v21 = vpop.f32.mrf.mxu1 }
 0x11c   : > { %v450_v24 = vadd.f32 %v449_v21, %v336_v16 }
 0x11d   : > { %v338_v25 = vpop.f32.mrf.mxu0  ;;  %v451_v26 = vpop.f32.mrf.mxu1 }
 0x11e   : > { %v452_v22 = vadd.f32 %v451_v26, %v338_v25 }
 0x121   : > { %v342_v23 = vpop.f32.mrf.mxu0  ;;  %v455_v28 = vpop.f32.mrf.mxu1 }
 0x122   : > { %v456_v29 = vadd.f32 %v455_v28, %v342_v23 }
 0x123   : > { %v344_v32 = vpop.f32.mrf.mxu0  ;;  %v457_v33 = vpop.f32.mrf.mxu1 }
 0x124   : > { %v458_v30 = vadd.f32 %v457_v33, %v344_v32 }
 0x127   : > { %v348_v31 = vpop.f32.mrf.mxu0  ;;  %v461_v42 = vpop.f32.mrf.mxu1 }
 0x128   : > { %v462_v43 = vadd.f32 %v461_v42, %v348_v31 }
 0x129   : > { %v350_v35 = vpop.f32.mrf.mxu0  ;;  %v463_v36 = vpop.f32.mrf.mxu1 }
 0x12a   : > { %v2288_v52 = vadd.f32 %v463_v36, %v350_v35 }
 0x12d   : > { %v573_v53 = vpop.f32.mrf.mxu0  ;;  %v744_v13 = vpop.f32.mrf.mxu1 }
 0x12e   : > { %v620_v37 = vadd.f32 %v573_v53, %v420_v54 }
 0x12f   : > { %v575_v62 = vpop.f32.mrf.mxu0  ;;  %v746_v63 = vpop.f32.mrf.mxu1 }
 0x130   : > { %v2290_v40 = vadd.f32 %v744_v13, %v620_v37  ;;  %v621_v10 = vadd.f32 %v575_v62, %v422_v58 }
 0x132   : > { %v2292_v9 = vadd.f32 %v746_v63, %v621_v10 }
 0x133   : > { %v579_v41 = vpop.f32.mrf.mxu0  ;;  %v750_v45 = vpop.f32.mrf.mxu1 }
 0x134   : > { %v622_v46 = vadd.f32 %v579_v41, %v426_v59 }
 0x135   : > { %v581_v47 = vpop.f32.mrf.mxu0  ;;  %v752_v39 = vpop.f32.mrf.mxu1 }
 0x136   : > { %v2294_v48 = vadd.f32 %v750_v45, %v622_v46  ;;  %v623_v49 = vadd.f32 %v581_v47, %v428_v1 }
 0x138   : > { %v2296_v50 = vadd.f32 %v752_v39, %v623_v49 }
 0x139   : > { %v585_v51 = vpop.f32.mrf.mxu0  ;;  %v756_v56 = vpop.f32.mrf.mxu1 }
 0x13a   : > { %v624_v54 = vadd.f32 %v585_v51, %v432_v12 }
 0x13b   : > { %v587_v57 = vpop.f32.mrf.mxu0  ;;  %v758_v44 = vpop.f32.mrf.mxu1 }
 0x13c   : > { %v2298_v27 = vadd.f32 %v756_v56, %v624_v54  ;;  %v625_v58 = vadd.f32 %v587_v57, %v434_v6 }
 0x13e   : > { %v2300_v60 = vadd.f32 %v758_v44, %v625_v58 }
 0x13f   : > { %v591_v61 = vpop.f32.mrf.mxu0  ;;  %v762_v55 = vpop.f32.mrf.mxu1 }
 0x140   : > { %v626_v59 = vadd.f32 %v591_v61, %v438_v5 }
 0x141   : > { %v593_v38 = vpop.f32.mrf.mxu0  ;;  %v764_v2 = vpop.f32.mrf.mxu1 }
 0x142   : > { %v2302_v34 = vadd.f32 %v762_v55, %v626_v59  ;;  %v627_v1 = vadd.f32 %v593_v38, %v440_v14 }
 0x144   : > { %v2304_v4 = vadd.f32 %v764_v2, %v627_v1 }
 0x145   : > { %v597_v3 = vpop.f32.mrf.mxu0  ;;  %v768_v7 = vpop.f32.mrf.mxu1 }
 0x146   : > { %v628_v12 = vadd.f32 %v597_v3, %v444_v0 }
 0x147   : > { %v599_v8 = vpop.f32.mrf.mxu0  ;;  %v770_v11 = vpop.f32.mrf.mxu1 }
 0x148   : > { %v2306_v15 = vadd.f32 %v768_v7, %v628_v12  ;;  %v629_v6 = vadd.f32 %v599_v8, %v446_v20 }
 0x14a   : > { %v2308_v17 = vadd.f32 %v770_v11, %v629_v6 }
 0x14b   : > { %v603_v18 = vpop.f32.mrf.mxu0  ;;  %v774_v19 = vpop.f32.mrf.mxu1 }
 0x14c   : > { %v630_v5 = vadd.f32 %v603_v18, %v450_v24 }
 0x14d   : > { %v605_v16 = vpop.f32.mrf.mxu0  ;;  %v776_v21 = vpop.f32.mrf.mxu1 }
 0x14e   : > { %v2310_v25 = vadd.f32 %v774_v19, %v630_v5  ;;  %v631_v14 = vadd.f32 %v605_v16, %v452_v22 }
 0x150   : > { %v2312_v26 = vadd.f32 %v776_v21, %v631_v14 }
 0x151   : > { %v609_v23 = vpop.f32.mrf.mxu0  ;;  %v780_v28 = vpop.f32.mrf.mxu1 }
 0x152   : > { %v632_v0 = vadd.f32 %v609_v23, %v456_v29 }
 0x153   : > { %v611_v32 = vpop.f32.mrf.mxu0  ;;  %v782_v33 = vpop.f32.mrf.mxu1 }
 0x154   : > { %v2314_v31 = vadd.f32 %v780_v28, %v632_v0  ;;  %v633_v20 = vadd.f32 %v611_v32, %v458_v30 }
 0x156   : > { %v2316_v42 = vadd.f32 %v782_v33, %v633_v20 }
 0x157   : > { %v615_v35 = vpop.f32.mrf.mxu0  ;;  %v786_v36 = vpop.f32.mrf.mxu1 }
 0x158   : > { %v634_v24 = vadd.f32 %v615_v35, %v462_v43 }
 0x159   : > { %v617_v53 = vpop.f32.mrf.mxu0  ;;  %v788_v13 = vpop.f32.mrf.mxu1 }
 0x15a   : > { %v2318_v37 = vadd.f32 %v786_v36, %v634_v24  ;;  %v635_v22 = vadd.f32 %v617_v53, %v2288_v52 }
 0x15c   : > { %2534 = vst [vmem:[#allocation5_spill] sm:$0xff] %v2318_v37  ;;  %v2321_v62 = vadd.f32 %v788_v13, %v635_v22 }
 0x15d   : > { %v914_v63 = vpop.f32.mrf.mxu0  ;;  %v1084_v29 = vpop.f32.mrf.mxu1 }
 0x15e   : > { %2535 = vst [vmem:[#allocation6_spill] sm:$0xff] %v2321_v62 }
 0x15f   : > { %v916_v10 = vpop.f32.mrf.mxu0  ;;  %v2323_v41 = vpop.f32.mrf.mxu1 }
 0x163   : > { %v920_v45 = vpop.f32.mrf.mxu0  ;;  %v2325_v30 = vpop.f32.mrf.mxu1 }
 0x165   : > { %v922_v46 = vpop.f32.mrf.mxu0  ;;  %v2327_v47 = vpop.f32.mrf.mxu1 }
 0x169   : > { %v926_v43 = vpop.f32.mrf.mxu0  ;;  %v2329_v39 = vpop.f32.mrf.mxu1 }
 0x16b   : > { %v928_v49 = vpop.f32.mrf.mxu0  ;;  %v2331_v51 = vpop.f32.mrf.mxu1 }
 0x16f   : > { %v932_v52 = vpop.f32.mrf.mxu0  ;;  %v2333_v56 = vpop.f32.mrf.mxu1 }
 0x171   : > { %v934_v54 = vpop.f32.mrf.mxu0  ;;  %v2335_v57 = vpop.f32.mrf.mxu1 }
 0x175   : > { %v938_v44 = vpop.f32.mrf.mxu0  ;;  %v2337_v58 = vpop.f32.mrf.mxu1 }
 0x177   : > { %v2339_v61 = vpop.f32.mrf.mxu0  ;;  %v2341_v55 = vpop.f32.mrf.mxu1 }
 0x17b   : > { %v2343_v59 = vpop.f32.mrf.mxu0  ;;  %v2345_v38 = vpop.f32.mrf.mxu1 }
 0x17d   : > { %v2347_v2 = vpop.f32.mrf.mxu0  ;;  %v2349_v1 = vpop.f32.mrf.mxu1 }
 0x181   : > { %v2351_v3 = vpop.f32.mrf.mxu0  ;;  %v2353_v7 = vpop.f32.mrf.mxu1 }
 0x183   : > { %v2355_v12 = vpop.f32.mrf.mxu0  ;;  %v2357_v8 = vpop.f32.mrf.mxu1 }
 0x184   : > { %2536 = vst [vmem:[#allocation7_spill] sm:$0xff] %v2355_v12  ;;  %2537 = vst [vmem:[#allocation8_spill] sm:$0xff] %v2357_v8 }
 0x187   : > { %v2359_v11 = vpop.f32.mrf.mxu0  ;;  %v2361_v6 = vpop.f32.mrf.mxu1 }
 0x188   : > { %2538 = vst [vmem:[#allocation9_spill] sm:$0xff] %v2359_v11  ;;  %2539 = vst [vmem:[#allocation10_spill] sm:$0xff] %v2361_v6 }
 0x189   : > { %v2363_v18 = vpop.f32.mrf.mxu0  ;;  %v2365_v19 = vpop.f32.mrf.mxu1 }
 0x18a   : > { %2540 = vst [vmem:[#allocation11_spill] sm:$0xff] %v2363_v18  ;;  %2541 = vst [vmem:[#allocation12_spill] sm:$0xff] %v2365_v19 }
 0x18d   : > { %v1255_v5 = vpop.f32.mrf.mxu0  ;;  %v1425_v16 = vpop.f32.mrf.mxu1 }
 0x18f   : > { %v1257_v21 = vpop.f32.mrf.mxu0  ;;  %v1427_v14 = vpop.f32.mrf.mxu1 }
 0x193   : > { %v1261_v23 = vpop.f32.mrf.mxu0  ;;  %v1431_v28 = vpop.f32.mrf.mxu1 }
 0x195   : > { %v1263_v0 = vpop.f32.mrf.mxu0  ;;  %v2367_v32 = vpop.f32.mrf.mxu1 }
 0x199   : > { %v1267_v33 = vpop.f32.mrf.mxu0  ;;  %v2369_v20 = vpop.f32.mrf.mxu1 }
 0x19b   : > { %v2371_v35 = vpop.f32.mrf.mxu0  ;;  %v2373_v36 = vpop.f32.mrf.mxu1 }
 0x19c   : > { %2542 = vst [vmem:[#allocation13_spill] sm:$0xff] %v2373_v36 }
 0x19f   : > { %v2375_v24 = vpop.f32.mrf.mxu0  ;;  %v2377_v53 = vpop.f32.mrf.mxu1 }
 0x1a0   : > { %2543 = vst [vmem:[#allocation14_spill] sm:$0xff] %v2377_v53 }
 0x1a1   : > { %v2379_v13 = vpop.f32.mrf.mxu0  ;;  %v2381_v22 = vpop.f32.mrf.mxu1 }
 0x1a2   : > { %2544 = vst [vmem:[#allocation15_spill] sm:$0xff] %v2379_v13  ;;  %2545 = vst [vmem:[#allocation16_spill] sm:$0xff] %v2381_v22  ;;  %v961_v22 = vadd.f32 %v914_v63, %v2290_v40  ;;  %v966_v63 = vadd.f32 %v928_v49, %v2300_v60 }
 0x1a4   : > { %v1136_v60 = vadd.f32 %v2331_v51, %v966_v63 }
 0x1a5   : > { %v2383_v19 = vpop.f32.mrf.mxu0  ;;  %v2385_v18 = vpop.f32.mrf.mxu1 }
 0x1a6   : > { %2546 = vst [vmem:[#allocation17_spill] sm:$0xff] %v2385_v18 }
 0x1a7   : > { %v2387_v62 = vpop.f32.mrf.mxu0  ;;  %v2389_v6 = vpop.f32.mrf.mxu1 }
 0x1a8   : > { %2547 = vst [vmem:[#allocation18_spill] sm:$0xff] %v2387_v62  ;;  %2548 = vst [vmem:[#allocation19_spill] sm:$0xff] %v2389_v6  ;;  %v962_v6 = vadd.f32 %v916_v10, %v2292_v9  ;;  %v1131_v62 = vadd.f32 %v1084_v29, %v961_v22  ;;  %v968_v10 = vadd.f32 %v934_v54, %v2304_v4 }
 0x1a9   : > { %v2561_v22 = vld [vmem:[#allocation15_spill] sm:$0xff] }
 0x1aa   : > { %v1302_v40 = vadd.f32 %v1255_v5, %v1131_v62  ;;  %v1138_v49 = vadd.f32 %v2335_v57, %v968_v10  ;;  %v1307_v57 = vadd.f32 %v2371_v35, %v1136_v60 }
 0x1ab   : > { %v2391_v8 = vpop.f32.mrf.mxu0  ;;  %v2393_v11 = vpop.f32.mrf.mxu1 }
 0x1ac   : > { %2549 = vst [vmem:[#allocation20_spill] sm:$0xff] %v2391_v8  ;;  %2550 = vst [vmem:[#allocation21_spill] sm:$0xff] %v2393_v11  ;;  %v963_v8 = vadd.f32 %v920_v45, %v2294_v48  ;;  %v967_v48 = vadd.f32 %v932_v52, %v2302_v34  ;;  %v1472_v62 = vadd.f32 %v1425_v16, %v1302_v40 }
 0x1ad   : > { %v2395_v36 = vpop.f32.mrf.mxu0  ;;  %v2397_v37 = vpop.f32.mrf.mxu1  ;;  %v972_v34 = vadd.f32 %v2347_v2, %v2312_v26 }
 0x1ae   : > { %2551 = vst [vmem:[#allocation22_spill] sm:$0xff] %v2395_v36  ;;  %2552 = vst [vmem:[#allocation23_spill] sm:$0xff] %v2397_v37  ;;  %v1132_v37 = vadd.f32 %v2323_v41, %v962_v6  ;;  %v1133_v9 = vadd.f32 %v2325_v30, %v963_v8  ;;  %v969_v41 = vadd.f32 %v938_v44, %v2306_v15 }
 0x1af   : > { %v971_v30 = vadd.f32 %v2343_v59, %v2310_v25  ;;  %v1137_v15 = vadd.f32 %v2333_v56, %v967_v48  ;;  %v1142_v2 = vadd.f32 %v2349_v1, %v972_v34 }
 0x1b0   : > { %v1303_v29 = vadd.f32 %v1257_v21, %v1132_v37  ;;  %v1304_v45 = vadd.f32 %v1261_v23, %v1133_v9  ;;  %v1139_v51 = vadd.f32 %v2337_v58, %v969_v41 }
 0x1b1   : > { %v2399_v53 = vpop.f32.mrf.mxu0  ;;  %v2401_v13 = vpop.f32.mrf.mxu1  ;;  %v1141_v59 = vadd.f32 %v2345_v38, %v971_v30  ;;  %v1308_v1 = vadd.f32 %v2375_v24, %v1137_v15  ;;  %v2562_v24 = vld [vmem:[#allocation17_spill] sm:$0xff]  ;;  %v2566_v30 = vld [vmem:[#allocation8_spill] sm:$0xff] }
 0x1b2   : > { %2553 = vst [vmem:[#allocation24_spill] sm:$0xff] %v2399_v53  ;;  %2554 = vst [vmem:[#allocation25_spill] sm:$0xff] %v2401_v13  ;;  %v964_v53 = vadd.f32 %v922_v46, %v2296_v50  ;;  %v965_v13 = vadd.f32 %v926_v43, %v2298_v27  ;;  %v970_v46 = vadd.f32 %v2339_v61, %v2308_v17 }
 0x1b3   : > { %v2404_v12 = vpop.f32.mrf.mxu0  ;;  %v2406_v18 = vpop.f32.mrf.mxu1  ;;  %v973_v17 = vadd.f32 %v2351_v3, %v2314_v31  ;;  %v1474_v44 = vadd.f32 %v1431_v28, %v1304_v45  ;;  %v1310_v21 = vadd.f32 %v2383_v19, %v1139_v51  ;;  %v2557_v28 = vld [vmem:[#allocation7_spill] sm:$0xff]  ;;  %v1309_v19 = vadd.f32 %v2561_v22, %v1138_v49  ;;  %v2564_v41 = vld [vmem:[#allocation20_spill] sm:$0xff] }
 0x1b4   : > { %2555 = vst [vmem:[#allocation26_spill] sm:$0xff] %v2404_v12  ;;  %2556 = vst [vmem:[#allocation27_spill] sm:$0xff] %v2406_v18  ;;  %v1134_v50 = vadd.f32 %v2327_v47, %v964_v53  ;;  %v1135_v27 = vadd.f32 %v2329_v39, %v965_v13  ;;  %v1473_v47 = vadd.f32 %v1427_v14, %v1303_v29  ;;  %v2560_v53 = vld [vmem:[#allocation13_spill] sm:$0xff]  ;;  %v2563_v29 = vld [vmem:[#allocation18_spill] sm:$0xff] }
 0x1b5   : > { %v1140_v56 = vadd.f32 %v2341_v55, %v970_v46  ;;  %v1143_v5 = vadd.f32 %v2353_v7, %v973_v17  ;;  %v1477_v7 = vadd.f32 %v2560_v53, %v1307_v57  ;;  %v1480_v48 = vadd.f32 %v2562_v24, %v1310_v21  ;;  %v2568_v49 = vld [vmem:[#allocation16_spill] sm:$0xff]  ;;  %v2573_v21 = vld [vmem:[#allocation6_spill] sm:$0xff] }
 0x1b6   : > { %v1305_v43 = vadd.f32 %v1263_v0, %v1134_v50  ;;  %v1306_v52 = vadd.f32 %v1267_v33, %v1135_v27  ;;  %v974_v0 = vadd.f32 %v2557_v28, %v2316_v42  ;;  %v2559_v33 = vld [vmem:[#allocation9_spill] sm:$0xff]  ;;  %v1312_v42 = vadd.f32 %v2564_v41, %v1141_v59  ;;  %v2571_v59 = vld [vmem:[#allocation22_spill] sm:$0xff] }
 0x1b7   : > { %v2410_v11 = vpop.f32.mrf.mxu0  ;;  %v2412_v36 = vpop.f32.mrf.mxu1  ;;  %v1311_v10 = vadd.f32 %v2563_v29, %v1140_v56  ;;  %v1479_v51 = vadd.f32 %v2568_v49, %v1309_v19  ;;  %v1313_v57 = vadd.f32 %v2571_v59, %v1142_v2 }
 0x1b8   : > { %v1475_v8 = vadd.f32 %v2367_v32, %v1305_v43  ;;  %v1476_v16 = vadd.f32 %v2369_v20, %v1306_v52  ;;  %v2558_v32 = vld [vmem:[#allocation5_spill] sm:$0xff]  ;;  %v1144_v34 = vadd.f32 %v2566_v30, %v974_v0 }
 0x1b9   : > { %v2418_v12 = vpop.f32.mrf.mxu0  ;;  %v2420_v18 = vpop.f32.mrf.mxu1  ;;  %v975_v35 = vadd.f32 %v2559_v33, %v2558_v32  ;;  %v2575_v33 = vld [vmem:[#allocation23_spill] sm:$0xff] }
 0x1bb   : > { %v2576_v53 = vld [vmem:[#allocation26_spill] sm:$0xff] }
 0x1bd   : > { %v1595_v4 = vpop.f32.mrf.mxu0  ;;  %v1619_v37 = vpop.f32.mrf.mxu1 }
 0x1be   : > { %v1642_v39 = vadd.f32 %v1595_v4, %v1472_v62  ;;  %v2565_v62 = vld [vmem:[#allocation14_spill] sm:$0xff] }
 0x1bf   : > { %v1597_v54 = vpop.f32.mrf.mxu0  ;;  %v2440_v25 = vpop.f32.mrf.mxu1  ;;  %v1478_v45 = vadd.f32 %v2565_v62, %v1308_v1  ;;  %v2567_v4 = vld [vmem:[#allocation10_spill] sm:$0xff] }
 0x1c0   : > { %v1643_v26 = vadd.f32 %v1597_v54, %v1473_v47  ;;  %vm1658_vm0 = vcmp.gt.f32.partialorder %v1642_v39, 0.0  ;;  %v1674_v61 = vmul.f32 -3.7, %v1642_v39  ;;  %v1145_v15 = vadd.f32 %v2567_v4, %v975_v35 }
 0x1c1   : > { %v1601_v58 = vpop.f32.mrf.mxu0  ;;  %v1625_v3 = vpop.f32.mrf.mxu1  ;;  %v1650_v47 = vadd.f32 %v1619_v37, %v1480_v48  ;;  %v1483_v35 = vadd.f32 %v2575_v33, %v1313_v57 }
 0x1c2   : > { %v1644_v31 = vadd.f32 %v1601_v58, %v1474_v44  ;;  %v1690_v6 = vsel %vm1658_vm0, %v1642_v39, %v1674_v61  ;;  %vm1659_vm1 = vcmp.gt.f32.partialorder %v1643_v26, 0.0  ;;  %v1675_v38 = vmul.f32 -3.7, %v1643_v26  ;;  %v2569_v44 = vld [vmem:[#allocation19_spill] sm:$0xff]  ;;  %v2570_v61 = vld [vmem:[#allocation21_spill] sm:$0xff] }
 0x1c3   : > { %v1603_v55 = vpop.f32.mrf.mxu0  ;;  %1706 = vxpose.xlu0.b32.start [1/8] (short) %v1690_v6, 128  ;;  %v1627_v40 = vpop.f32.mrf.mxu1  ;;  %v1482_v56 = vadd.f32 %v2570_v61, %v1312_v42  ;;  %vm1666_vm8 = vcmp.gt.f32.partialorder %v1650_v47, 0.0  ;;  %vm1770_vm0 = vcmask 523264  }
 0x1c4   : > { %v1645_v14 = vadd.f32 %v1603_v55, %v1475_v8  ;;  %vm1660_vm2 = vcmp.gt.f32.partialorder %v1644_v31, 0.0  ;;  %v1676_v23 = vmul.f32 -3.7, %v1644_v31  ;;  %v1691_v20 = vsel %vm1659_vm1, %v1643_v26, %v1675_v38  ;;  %v2574_v55 = vld [vmem:[#allocation11_spill] sm:$0xff] }
 0x1c5   : > { %v1607_v13 = vpop.f32.mrf.mxu0  ;;  %1738 = vxpose.xlu1.b32.start [1/8] (short) (narrow) %v1691_v20, 40  ;;  %v1631_v17 = vpop.f32.mrf.mxu1  ;;  %v1481_v26 = vadd.f32 %v2569_v44, %v1311_v10  ;;  %v976_v38 = vadd.f32 %v2574_v55, %v2573_v21  ;;  %v1652_v28 = vadd.f32 %v1625_v3, %v1482_v56  ;;  %v1316_v20 = vadd.f32 %v2410_v11, %v1145_v15  ;;  %v2579_v10 = vld [vmem:[#allocation27_spill] sm:$0xff] }
 0x1c6   : > { %v1646_v63 = vadd.f32 %v1607_v13, %v1476_v16  ;;  %v1692_v9 = vsel %vm1660_vm2, %v1644_v31, %v1676_v23  ;;  %vm1661_vm3 = vcmp.gt.f32.partialorder %v1645_v14, 0.0  ;;  %v1677_v27 = vmul.f32 -3.7, %v1645_v14  ;;  %v2572_v31 = vld [vmem:[#allocation24_spill] sm:$0xff] }
 0x1c7   : > { %v1609_v50 = vpop.f32.mrf.mxu0  ;;  %1707 = vxpose.xlu0.b32.cont [2/8] (short) %v1692_v9, 128  ;;  %v1314_v37 = vadd.f32 %v2572_v31, %v1143_v5  ;;  %v1651_v1 = vadd.f32 %v2440_v25, %v1481_v26  ;;  %v1682_v23 = vmul.f32 -3.7, %v1650_v47  ;;  %v1633_v0 = vpop.f32.mrf.mxu1  ;;  %v1315_v5 = vadd.f32 %v2576_v53, %v1144_v34  ;;  %v2578_v25 = vld [vmem:[#allocation12_spill] sm:$0xff] }
 0x1c8   : > { %v1647_v60 = vadd.f32 %v1609_v50, %v1477_v7  ;;  %vm1662_vm4 = vcmp.gt.f32.partialorder %v1646_v63, 0.0  ;;  %v1678_v46 = vmul.f32 -3.7, %v1646_v63  ;;  %v1693_v39 = vsel %vm1661_vm3, %v1645_v14, %v1677_v27  ;;  %v2577_v7 = vld [vmem:[#allocation25_spill] sm:$0xff] }
 0x1c9   : > { %v1613_v43 = vpop.f32.mrf.mxu0  ;;  %1739 = vxpose.xlu1.b32.cont [2/8] (short) (narrow) %v1693_v39, 40  ;;  %v1484_v13 = vadd.f32 %v2577_v7, %v1314_v37  ;;  %v1146_v19 = vadd.f32 %v2578_v25, %v976_v38  ;;  %v1683_v3 = vmul.f32 -3.7, %v1651_v1  ;;  %v1637_v24 = vpop.f32.mrf.mxu1  ;;  %v1698_v48 = vsel %vm1666_vm8, %v1650_v47, %v1682_v23 }
 0x1ca   : > { %v1648_v52 = vadd.f32 %v1613_v43, %v1478_v45  ;;  %v1694_v54 = vsel %vm1662_vm4, %v1646_v63, %v1678_v46  ;;  %vm1663_vm5 = vcmp.gt.f32.partialorder %v1647_v60, 0.0  ;;  %v1679_v8 = vmul.f32 -3.7, %v1647_v60 }
 0x1cb   : > { %v1615_v58 = vpop.f32.mrf.mxu0  ;;  %1708 = vxpose.xlu0.b32.cont [3/8] (short) %v1694_v54, 128  ;;  %v1653_v63 = vadd.f32 %v1627_v40, %v1483_v35  ;;  %v1654_v9 = vadd.f32 %v1631_v17, %v1484_v13  ;;  %vm1667_vm9 = vcmp.gt.f32.partialorder %v1651_v1, 0.0  ;;  %v1684_v29 = vmul.f32 -3.7, %v1652_v28  ;;  %v1639_v40 = vpop.f32.mrf.mxu1 }
 0x1cc   : > { %v1649_v6 = vadd.f32 %v1615_v58, %v1479_v51  ;;  %vm1664_vm6 = vcmp.gt.f32.partialorder %v1648_v52, 0.0  ;;  %v1680_v16 = vmul.f32 -3.7, %v1648_v52  ;;  %v1695_v14 = vsel %vm1663_vm5, %v1647_v60, %v1679_v8 }
 0x1cd   : > { %1740 = vxpose.xlu1.b32.cont [3/8] (short) (narrow) %v1695_v14, 40  ;;  %v1485_v41 = vadd.f32 %v2579_v10, %v1315_v5  ;;  %v1317_v42 = vadd.f32 %v2418_v12, %v1146_v19  ;;  %vm1668_vm10 = vcmp.gt.f32.partialorder %v1652_v28, 0.0  ;;  %v1486_v50 = vadd.f32 %v2412_v36, %v1316_v20 }
 0x1ce   : > { %v1696_v32 = vsel %vm1664_vm6, %v1648_v52, %v1680_v16  ;;  %vm1665_vm7 = vcmp.gt.f32.partialorder %v1649_v6, 0.0  ;;  %v1681_v2 = vmul.f32 -3.7, %v1649_v6  ;;  %v1699_v27 = vsel %vm1667_vm9, %v1651_v1, %v1683_v3 }
 0x1cf   : > { %1709 = vxpose.xlu0.b32.cont [4/8] (short) %v1696_v32, 128  ;;  %v1655_v11 = vadd.f32 %v1633_v0, %v1485_v41  ;;  %v1685_v62 = vmul.f32 -3.7, %v1653_v63  ;;  %v1656_v45 = vadd.f32 %v1637_v24, %v1486_v50  ;;  %v1700_v60 = vsel %vm1668_vm10, %v1652_v28, %v1684_v29 }
 0x1d0   : > { %v1697_v22 = vsel %vm1665_vm7, %v1649_v6, %v1681_v2  ;;  %vm1669_vm11 = vcmp.gt.f32.partialorder %v1653_v63, 0.0  ;;  %v1686_v46 = vmul.f32 -3.7, %v1654_v9  ;;  %v1487_v30 = vadd.f32 %v2420_v18, %v1317_v42 }
 0x1d1   : > { %1741 = vxpose.xlu1.b32.cont [4/8] (short) (narrow) %v1697_v22, 40  ;;  %vm1670_vm12 = vcmp.gt.f32.partialorder %v1654_v9, 0.0  ;;  %v1701_v4 = vsel %vm1669_vm11, %v1653_v63, %v1685_v62  ;;  %v1687_v12 = vmul.f32 -3.7, %v1655_v11  ;;  %vm1671_vm13 = vcmp.gt.f32.partialorder %v1655_v11, 0.0 }
 0x1d2   : > { %v1657_v34 = vadd.f32 %v1639_v40, %v1487_v30  ;;  %v1702_v15 = vsel %vm1670_vm12, %v1654_v9, %v1686_v46  ;;  %v1688_v36 = vmul.f32 -3.7, %v1656_v45  ;;  %vm1672_vm14 = vcmp.gt.f32.partialorder %v1656_v45, 0.0 }
 0x1d3   : > { %1710 = vxpose.xlu0.b32.cont [5/8] (short) %v1698_v48, 128  ;;  %v1703_v47 = vsel %vm1671_vm13, %v1655_v11, %v1687_v12  ;;  %vm1791_vm1 = vcmask 517120  }
 0x1d4   : > { %v1689_v43 = vmul.f32 -3.7, %v1657_v34  ;;  %v1704_v39 = vsel %vm1672_vm14, %v1656_v45, %v1688_v36  ;;  %vm1673_vm15 = vcmp.gt.f32.partialorder %v1657_v34, 0.0 }
 0x1d5   : > { %1742 = vxpose.xlu1.b32.cont [5/8] (short) (narrow) %v1699_v27, 40 }
 0x1d6   : > { %v1705_v49 = vsel %vm1673_vm15, %v1657_v34, %v1689_v43 }
 0x1d7   : > { %1711 = vxpose.xlu0.b32.cont [6/8] (short) %v1700_v60, 128 }
 0x1d9   : > { %1743 = vxpose.xlu1.b32.cont [6/8] (short) (narrow) %v1701_v4, 40 }
 0x1db   : > { %1712 = vxpose.xlu0.b32.cont [7/8] (short) %v1702_v15, 128 }
 0x1dd   : > { %1744 = vxpose.xlu1.b32.cont [7/8] (short) (narrow) %v1703_v47, 40 }
 0x1df   : > { %1713 = vxpose.xlu0.b32.end [8/8] (short) %v1704_v39, 128 }
 0x1e1   : > { %1745 = vxpose.xlu1.b32.end [8/8] (short) (narrow) %v1705_v49, 40 }
 0x23f   : > { %v1722_v18 = vpop.trf.xlu0 }
 0x240   : > { %1771 = vst.msk [vmem:[%s2484_s26] sm:$0xff] %vm1770_vm0, %v1722_v18 }
 0x241   : > { %v1754_v51 = vpop.trf.xlu1 }
 0x242   : > { %1787 = vst.msk [vmem:[%s2484_s26 + $0x80] sm:$0xff] %vm1770_vm0, %v1754_v51 }
 0x243   : > { %v1723_v17 = vpop.trf.xlu0 }
 0x244   : > { %1772 = vst.msk [vmem:[%s2484_s26 + $0x8] sm:$0xff] %vm1770_vm0, %v1723_v17 }
 0x245   : > { %v1755_v52 = vpop.trf.xlu1 }
 0x246   : > { %1788 = vst.msk [vmem:[%s2484_s26 + $0x88] sm:$0xff] %vm1770_vm0, %v1755_v52 }
 0x247   : > { %v1724_v54 = vpop.trf.xlu0 }
 0x248   : > { %1773 = vst.msk [vmem:[%s2484_s26 + $0x10] sm:$0xff] %vm1770_vm0, %v1724_v54 }
 0x249   : > { %v1756_v44 = vpop.trf.xlu1 }
 0x24a   : > { %1789 = vst.msk [vmem:[%s2484_s26 + $0x90] sm:$0xff] %vm1770_vm0, %v1756_v44 }
 0x24b   : > { %v1725_v26 = vpop.trf.xlu0 }
 0x24c   : > { %1774 = vst.msk [vmem:[%s2484_s26 + $0x18] sm:$0xff] %vm1770_vm0, %v1725_v26 }
 0x24d   : > { %v1757_v61 = vpop.trf.xlu1 }
 0x24e   : > { %1790 = vst.msk [vmem:[%s2484_s26 + $0x98] sm:$0xff] %vm1770_vm0, %v1757_v61 }
 0x24f   : > { %v1726_v56 = vpop.trf.xlu0 }
 0x250   : > { %1775 = vst.msk [vmem:[%s2484_s26 + $0x20] sm:$0xff] %vm1770_vm0, %v1726_v56 }
 0x251   : > { %v1758_v59 = vpop.trf.xlu1 }
 0x252   : > { %1792 = vst.msk [vmem:[%s2484_s26 + $0xa0] sm:$0x3] %vm1791_vm1, %v1758_v59 }
 0x253   : > { %v1727_v57 = vpop.trf.xlu0 }
 0x254   : > { %1776 = vst.msk [vmem:[%s2484_s26 + $0x28] sm:$0xff] %vm1770_vm0, %v1727_v57 }
 0x257   : > { %v1728_v58 = vpop.trf.xlu0 }
 0x258   : > { %1777 = vst.msk [vmem:[%s2484_s26 + $0x30] sm:$0xff] %vm1770_vm0, %v1728_v58 }
 0x25b   : > { %v1729_v8 = vpop.trf.xlu0 }
 0x25c   : > { %1778 = vst.msk [vmem:[%s2484_s26 + $0x38] sm:$0xff] %vm1770_vm0, %v1729_v8 }
 0x25f   : > { %v1730_v31 = vpop.trf.xlu0 }
 0x260   : > { %1779 = vst.msk [vmem:[%s2484_s26 + $0x40] sm:$0xff] %vm1770_vm0, %v1730_v31 }
 0x263   : > { %v1731_v37 = vpop.trf.xlu0 }
 0x264   : > { %1780 = vst.msk [vmem:[%s2484_s26 + $0x48] sm:$0xff] %vm1770_vm0, %v1731_v37 }
 0x267   : > { %v1732_v6 = vpop.trf.xlu0 }
 0x268   : > { %1781 = vst.msk [vmem:[%s2484_s26 + $0x50] sm:$0xff] %vm1770_vm0, %v1732_v6 }
 0x26b   : > { %v1733_v16 = vpop.trf.xlu0 }
 0x26c   : > { %1782 = vst.msk [vmem:[%s2484_s26 + $0x58] sm:$0xff] %vm1770_vm0, %v1733_v16 }
 0x26f   : > { %v1734_v21 = vpop.trf.xlu0 }
 0x270   : > { %1783 = vst.msk [vmem:[%s2484_s26 + $0x60] sm:$0xff] %vm1770_vm0, %v1734_v21 }
 0x273   : > { %v1735_v55 = vpop.trf.xlu0 }
 0x274   : > { %1784 = vst.msk [vmem:[%s2484_s26 + $0x68] sm:$0xff] %vm1770_vm0, %v1735_v55 }
 0x277   : > { %v1736_v38 = vpop.trf.xlu0 }
 0x278   : > { %1785 = vst.msk [vmem:[%s2484_s26 + $0x70] sm:$0xff] %vm1770_vm0, %v1736_v38 }
 0x27b   : > { %v1737_v1 = vpop.trf.xlu0 }
 0x27c   : > { %1786 = vst.msk [vmem:[%s2484_s26 + $0x78] sm:$0xff] %vm1770_vm0, %v1737_v1 }
 0x27d PF: > { %s13_s9 = sadd.s32 1, %s2011_s9  }
 0x27e   : > { %p10_p1 = scmp.ge.s32.totalorder %s13_s9, 4  }
 0x280   :  { %12 = sbr.rel (!%p10_p1) target bundleno = 1 (0x1), region = 73 }
 0x285   :  { %1814 = vsyncpa [#allocation3], 1 }
 0x286   :  { %1816 = vsyncpa [#allocation3 + $0x1], 1 }

</bundles_post_ra>
